<compile_context>
chip_gen: v5e
topology: v5e:2x2
jax: 0.10.0
libtpu: 0.0.40
codegen_flags: <defaults>
</compile_context>

<pallas_src>
import functools

import numpy as np
import jax
import jax.numpy as jnp
from jax import lax
from jax.experimental import pallas as pl
from jax.experimental.pallas import tpu as pltpu

E_LAMBDA = 1e-4   # simam_module e_lambda
BN_EPS = 1e-5     # nn.BatchNorm2d default eps

# Distinct spatial taps used by conv_1..conv_4 (dilations 1..4).  The (0,0)
# tap coincides for all four dilations, so it appears once (its per-dilation
# weights are summed in the folding below).  The first 9 entries are exactly
# the dilation-1 taps used by the final 3x3 "out" conv.
_SHIFTS = []
for _d in (1, 2, 3, 4):
    for _i in (-1, 0, 1):
        for _j in (-1, 0, 1):
            _s = (_i * _d, _j * _d)
            if _s not in _SHIFTS:
                _SHIFTS.append(_s)
_SHIFTS = tuple(_SHIFTS)          # 33 distinct (dh, dw)
_N_OUT_TAPS = 9                   # _SHIFTS[:9] == dilation-1 3x3 taps


# --------------------------- in-kernel helpers ---------------------------------
def _simam(x, *, exact=False):
    """SimAM attention on a lane-flattened (rows, P) slab (f32)."""
    n = float(x.shape[-1] - 1)
    mu = jnp.mean(x, axis=-1, keepdims=True)
    d = (x - mu) ** 2
    s = jnp.sum(d, axis=-1, keepdims=True)
    denom = 4.0 * (s * (1.0 / n) + E_LAMBDA)            # (rows, 1): tiny
    inv = pl.reciprocal(denom, approx=not exact)
    return x * jax.nn.sigmoid(d * inv + 0.5)


# --------------------------- fused BFAM kernel ----------------------------------
def _bfam_kernel(W, inp1_ref, inp2_ref, masks_ref,
                 wfuse_ref, bfuse_ref, wout_ref, bout_ref, o_ref):
    f32 = jnp.float32
    bf16 = jnp.bfloat16
    inp1 = inp1_ref[...].astype(f32)          # (B*C, P) lane-dense slabs
    inp2 = inp2_ref[...].astype(f32)
    P = inp1.shape[-1]

    # Lazily loaded / cached boundary-mask rows (one VMEM read per shift).
    mask_cache = {}

    def tap(x, s_idx):
        """x shifted by _SHIFTS[s_idx] with zero padding (XLU roll + mask)."""
        dh, dw = _SHIFTS[s_idx]
        if dh == 0 and dw == 0:
            return x
        if s_idx not in mask_cache:
            mask_cache[s_idx] = masks_ref[s_idx:s_idx + 1, :]      # (1, P)
        # Static lane rotate on the XLU (vector-extended slot, off the VPU /
        # store path).  The boundary mask kills every wrapped / out-of-image
        # position, including wraps across the per-(b,c) row boundary, so the
        # circular rotate is exactly a zero-padded spatial shift.
        sh = (-(dh * W + dw)) % P
        return pltpu.roll(x, shift=sh, axis=1) * mask_cache[s_idx]

    # -- fuse path: conv_1..conv_4 (grouped, dilated 3x3) -> 1x1 fuse conv ->
    #    eval-mode BN, for BOTH batch elements, folded into a single matmul.
    #    Every tap block is a full 8-sublane slab -> aligned concat, bf16 MXU
    #    operands with f32 accumulation.
    blocks = []
    for s_idx in range(len(_SHIFTS)):
        blocks.append(tap(inp1, s_idx))
        blocks.append(tap(inp2, s_idx))
    stacked = jnp.concatenate(blocks, axis=0).astype(bf16)         # (33*2*BC, P)
    fuse = jnp.dot(wfuse_ref[...], stacked, preferred_element_type=f32)
    fuse = jnp.maximum(fuse + bfuse_ref[...], 0.0)                 # bias+BN, ReLU

    # -- SimAM branches + residual mixing (elementwise, full-sublane slabs) ------
    s1 = _simam(inp1)                         # pre_siam(inp1)
    s2 = _simam(inp2)                         # lat_siam(inp2)
    fa = _simam(fuse)                         # fuse_siam(fuse)
    pre = fa + inp1 + inp2 + (s1 + s2) * fuse

    # -- self.out: 3x3 conv + eval-mode BN, batch-folded into one matmul ---------
    blocks2 = [tap(pre, s_idx) for s_idx in range(_N_OUT_TAPS)]
    stacked2 = jnp.concatenate(blocks2, axis=0).astype(bf16)       # (9*BC, P)
    out = jnp.dot(wout_ref[...], stacked2, preferred_element_type=f32)
    out = jnp.maximum(out + bout_ref[...], 0.0)

    # -- final fuse_siam (exact reciprocal: last stage, (8,1) denominator is free)
    #    and one lane-dense (x256) store.
    o_ref[...] = _simam(out, exact=True).astype(o_ref.dtype)


# --------------------------- wrapper: one-time folding + pallas_call ------------
def _fold_bfam_params(p, B, C, H, W):
    """Fold every conv / 1x1 / BatchNorm parameter of BFAM (eval mode) into two
    batch-folded matmul weights + per-row shifts, and build the boundary masks.
    Pure numpy; runs once at model-load time (hoisted off the per-call path)."""
    f32 = np.float32
    P = H * W
    BC = B * C
    n_s = len(_SHIFTS)
    shift_idx = {s: k for k, s in enumerate(_SHIFTS)}

    # Boundary masks, lane-dense (n_s, P); the (0,0) row stays all-ones (unused).
    hh, ww = np.meshgrid(np.arange(H), np.arange(W), indexing="ij")
    masks = np.ones((n_s, P), f32)
    for si, (dh, dw) in enumerate(_SHIFTS):
        ok = (hh + dh >= 0) & (hh + dh < H) & (ww + dw >= 0) & (ww + dw < W)
        masks[si] = ok.reshape(-1).astype(f32)

    # --- fuse path: grouped dilated convs -> 1x1 fuse -> BN ----------------------
    fw = np.asarray(p["fuse_w"], f32)                    # (C, 4C)
    scale = np.asarray(p["fuse_gamma"], f32) / np.sqrt(
        np.asarray(p["fuse_var"], f32) + BN_EPS)
    shift = np.asarray(p["fuse_beta"], f32) - np.asarray(p["fuse_mean"], f32) * scale

    wfuse = np.zeros((BC, n_s * 2 * BC), f32)            # batch block-diagonal
    bias = np.asarray(p["fuse_b"], f32).copy()           # (C,)
    for d in (1, 2, 3, 4):
        wd = np.asarray(p[f"conv{d}_w"], f32)            # (C, 2, 3, 3), groups=C
        bd = np.asarray(p[f"conv{d}_b"], f32)            # (C,)
        fw_d = fw[:, (d - 1) * C:d * C]                  # (C_out, C_groups)
        bias = bias + fw_d @ bd
        for i in range(3):
            for j in range(3):
                si = shift_idx[((i - 1) * d, (j - 1) * d)]
                for g in range(C):
                    for k in range(2):
                        xc = 2 * g + k                   # channel of cat([inp1, inp2])
                        src, ci = divmod(xc, C)          # 0 -> inp1, 1 -> inp2
                        w_eff = scale * fw_d[:, g] * wd[g, k, i, j]   # (C_out,)
                        col = si * 2 * BC + src * BC
                        for b in range(B):
                            wfuse[b * C:(b + 1) * C, col + b * C + ci] += w_eff
    bfuse = np.tile(shift + scale * bias, B).reshape(BC, 1)

    # --- out path: 3x3 conv -> BN -----------------------------------------------
    wo = np.asarray(p["out_w"], f32)                     # (Co, C, 3, 3)
    Co = wo.shape[0]
    scale2 = np.asarray(p["out_gamma"], f32) / np.sqrt(
        np.asarray(p["out_var"], f32) + BN_EPS)
    shift2 = np.asarray(p["out_beta"], f32) - np.asarray(p["out_mean"], f32) * scale2

    wout = np.zeros((B * Co, _N_OUT_TAPS * BC), f32)
    for i in range(3):
        for j in range(3):
            t = shift_idx[(i - 1, j - 1)]                # one of _SHIFTS[:9]
            for ci in range(C):
                w_eff = scale2 * wo[:, ci, i, j]         # (Co,)
                for b in range(B):
                    wout[b * Co:(b + 1) * Co, t * BC + b * C + ci] += w_eff
    bout = np.tile(shift2 + scale2 * np.asarray(p["out_b"], f32), B).reshape(B * Co, 1)
    return masks, wfuse, bfuse, wout, bout


def make_bfam(params, B, C, H, W, dtype=jnp.float32):
    """Fold BFAM parameters once and return a jitted forward(inp1, inp2)."""
    # TODO(synk): BatchNorm layers are folded with eval-mode running statistics;
    # training-mode batch statistics would need a cross-batch reduction.
    P = H * W
    BC = B * C
    masks, wfuse, bfuse, wout, bout = _fold_bfam_params(params, B, C, H, W)
    Co = wout.shape[0] // B

    masks_j = jnp.asarray(masks)                          # (33, P)    f32
    wfuse_j = jnp.asarray(wfuse, dtype=jnp.bfloat16)      # (BC, 33*2*BC)
    bfuse_j = jnp.asarray(bfuse)                          # (BC, 1)    f32
    wout_j = jnp.asarray(wout, dtype=jnp.bfloat16)        # (B*Co, 9*BC)
    bout_j = jnp.asarray(bout)                            # (B*Co, 1)  f32

    kernel = functools.partial(_bfam_kernel, W)
    # Whole (tiny) problem in one grid step; batch lives in the sublane axis of
    # every block so the single step is full-width.  For production sizes:
    # grid over batch / >=128-lane chunks of H*W marked "parallel" (v7x has 2
    # TensorCores), keep per-dilation stacks separate and set vmem_limit_bytes
    # so the im2col stacks stay inside v7x's 64 MiB VMEM.
    call = pl.pallas_call(
        kernel,
        out_shape=jax.ShapeDtypeStruct((B * Co, P), dtype),
        grid=(1,),
        in_specs=[
            pl.BlockSpec((BC, P), lambda i: (0, 0)),              # inp1 slab
            pl.BlockSpec((BC, P), lambda i: (0, 0)),              # inp2 slab
            pl.BlockSpec(masks_j.shape, lambda i: (0, 0)),        # boundary masks
            pl.BlockSpec(wfuse_j.shape, lambda i: (0, 0)),        # folded fuse weights
            pl.BlockSpec(bfuse_j.shape, lambda i: (0, 0)),        # folded fuse bias+BN
            pl.BlockSpec(wout_j.shape, lambda i: (0, 0)),         # folded out weights
            pl.BlockSpec(bout_j.shape, lambda i: (0, 0)),         # folded out bias+BN
        ],
        out_specs=pl.BlockSpec((B * Co, P), lambda i: (0, 0)),
        compiler_params=pltpu.CompilerParams(
            dimension_semantics=("arbitrary",)),
    )

    @jax.jit
    def forward(inp1, inp2):
        out = call(inp1.reshape(BC, P), inp2.reshape(BC, P),
                   masks_j, wfuse_j, bfuse_j, wout_j, bout_j)
        return out.reshape(B, Co, H, W)

    return forward


# --------------------------- pure-JAX reference (matches PyTorch BFAM, eval) ----
def _simam_ref(x):
    n = x.shape[2] * x.shape[3] - 1
    mu = x.mean(axis=(2, 3), keepdims=True)
    d = (x - mu) ** 2
    y = d / (4.0 * (d.sum(axis=(2, 3), keepdims=True) / n + E_LAMBDA)) + 0.5
    return x * jax.nn.sigmoid(y)


def _bn_ref(x, g, b, m, v):
    s = g / jnp.sqrt(v + BN_EPS)
    return x * s[None, :, None, None] + (b - m * s)[None, :, None, None]


def ref_bfam(inp1, inp2, p):
    C = inp1.shape[1]
    x = jnp.concatenate([inp1, inp2], axis=1)
    convs = []
    for d in range(1, 5):
        y = lax.conv_general_dilated(
            x, p[f"conv{d}_w"], window_strides=(1, 1),
            padding=[(d, d), (d, d)], rhs_dilation=(d, d),
            dimension_numbers=("NCHW", "OIHW", "NCHW"),
            feature_group_count=C)
        convs.append(y + p[f"conv{d}_b"][None, :, None, None])
    cat = jnp.concatenate(convs, axis=1)
    fuse = jnp.einsum("oc,bchw->bohw", p["fuse_w"], cat) \
        + p["fuse_b"][None, :, None, None]
    fuse = jax.nn.relu(_bn_ref(fuse, p["fuse_gamma"], p["fuse_beta"],
                               p["fuse_mean"], p["fuse_var"]))
    s1 = _simam_ref(inp1)
    s2 = _simam_ref(inp2)
    m1 = s1 * fuse
    m2 = s2 * fuse
    fuse = _simam_ref(fuse)
    pre = fuse + inp1 + inp2 + m2 + m1
    out = lax.conv_general_dilated(
        pre, p["out_w"], window_strides=(1, 1), padding=[(1, 1), (1, 1)],
        dimension_numbers=("NCHW", "OIHW", "NCHW"))
    out = out + p["out_b"][None, :, None, None]
    out = jax.nn.relu(_bn_ref(out, p["out_gamma"], p["out_beta"],
                              p["out_mean"], p["out_var"]))
    return _simam_ref(out)


if __name__ == "__main__":
    B, C, H, W = 2, 4, 16, 16          # BFAM(inp=C, out=C)
    f32 = jnp.float32
    keys = jax.random.split(jax.random.PRNGKey(0), 24)

    inp1 = jax.random.normal(keys[0], (B, C, H, W), f32)
    inp2 = jax.random.normal(keys[1], (B, C, H, W), f32)

    p = {}
    for d in range(1, 5):
        p[f"conv{d}_w"] = 0.2 * jax.random.normal(keys[2 * d], (C, 2, 3, 3), f32)
        p[f"conv{d}_b"] = 0.1 * jax.random.normal(keys[2 * d + 1], (C,), f32)
    p["fuse_w"] = 0.2 * jax.random.normal(keys[10], (C, 4 * C), f32)
    p["fuse_b"] = 0.1 * jax.random.normal(keys[11], (C,), f32)
    p["fuse_gamma"] = 1.0 + 0.1 * jax.random.normal(keys[12], (C,), f32)
    p["fuse_beta"] = 0.05 * jax.random.normal(keys[13], (C,), f32)
    p["fuse_mean"] = 0.1 * jax.random.normal(keys[14], (C,), f32)
    p["fuse_var"] = 1.0 + 0.2 * jnp.abs(jax.random.normal(keys[15], (C,), f32))
    p["out_w"] = 0.2 * jax.random.normal(keys[16], (C, C, 3, 3), f32)
    p["out_b"] = 0.1 * jax.random.normal(keys[17], (C,), f32)
    p["out_gamma"] = 1.0 + 0.1 * jax.random.normal(keys[18], (C,), f32)
    p["out_beta"] = 0.05 * jax.random.normal(keys[19], (C,), f32)
    p["out_mean"] = 0.1 * jax.random.normal(keys[20], (C,), f32)
    p["out_var"] = 1.0 + 0.2 * jnp.abs(jax.random.normal(keys[21], (C,), f32))

    fwd = make_bfam(p, B, C, H, W, dtype=inp1.dtype)     # fold once (model load)
    out = jax.block_until_ready(fwd(inp1, inp2))
    ref = jax.block_until_ready(ref_bfam(inp1, inp2, p))

    assert out.shape == (B, C, H, W)
    # Tolerance covers bf16 MXU operands (f32 accumulation) + the approximate
    # EUP reciprocal in the intermediate SimAM stages; the final SimAM uses the
    # exact reciprocal.
    err = float(jnp.max(jnp.abs(out - ref)))
    assert jnp.allclose(out, ref, rtol=2e-2, atol=3e-2), err
    print("KERNEL_OK")
</pallas_src>

<mosaic_0001>
module attributes {stable_mosaic.version = 11 : i64} {
  func.func @_bfam_kernel(%arg0: i32, %arg1: memref<8x256xf32, #tpu.memory_space<vmem>>, %arg2: memref<8x256xf32, #tpu.memory_space<vmem>>, %arg3: memref<33x256xf32, #tpu.memory_space<vmem>>, %arg4: memref<8x528xbf16, #tpu.memory_space<vmem>>, %arg5: memref<8x1xf32, #tpu.memory_space<vmem>>, %arg6: memref<8x72xbf16, #tpu.memory_space<vmem>>, %arg7: memref<8x1xf32, #tpu.memory_space<vmem>>, %arg8: memref<8x256xf32, #tpu.memory_space<vmem>>) attributes {dimension_semantics = [#tpu.dimension_semantics<arbitrary>], iteration_bounds = array<i64: 1>, scalar_prefetch = 0 : i64, scratch_operands = 0 : i64, tpu.core_type = #tpu.core_type<tc>, window_params = [{pipeline_mode = #tpu.pipeline_mode<synchronous>, transform_indices = @transform_0, window_bounds = array<i64: 8, 256>}, {pipeline_mode = #tpu.pipeline_mode<synchronous>, transform_indices = @transform_1, window_bounds = array<i64: 8, 256>}, {pipeline_mode = #tpu.pipeline_mode<synchronous>, transform_indices = @transform_2, window_bounds = array<i64: 33, 256>}, {pipeline_mode = #tpu.pipeline_mode<synchronous>, transform_indices = @transform_3, window_bounds = array<i64: 8, 528>}, {pipeline_mode = #tpu.pipeline_mode<synchronous>, transform_indices = @transform_4, window_bounds = array<i64: 8, 1>}, {pipeline_mode = #tpu.pipeline_mode<synchronous>, transform_indices = @transform_5, window_bounds = array<i64: 8, 72>}, {pipeline_mode = #tpu.pipeline_mode<synchronous>, transform_indices = @transform_6, window_bounds = array<i64: 8, 1>}, {pipeline_mode = #tpu.pipeline_mode<synchronous>, transform_indices = @transform_7, window_bounds = array<i64: 8, 256>}]} {
    %c0 = arith.constant 0 : index
    %c0_0 = arith.constant 0 : index
    %0 = vector.load %arg1[%c0, %c0_0] : memref<8x256xf32, #tpu.memory_space<vmem>>, vector<8x256xf32>
    %c0_1 = arith.constant 0 : index
    %c0_2 = arith.constant 0 : index
    %1 = vector.load %arg2[%c0_1, %c0_2] : memref<8x256xf32, #tpu.memory_space<vmem>>, vector<8x256xf32>
    %c0_3 = arith.constant 0 : index
    %c0_4 = arith.constant 0 : index
    %2 = vector.load %arg3[%c0_3, %c0_4] : memref<33x256xf32, #tpu.memory_space<vmem>>, vector<1x256xf32>
    %c17_i32 = arith.constant 17 : i32
    %3 = tpu.dynamic_rotate %0 by %c17_i32 dim 1 : vector<8x256xf32>, i32 -> vector<8x256xf32>
    %4 = vector.broadcast %2 : vector<1x256xf32> to vector<8x256xf32>
    %5 = arith.mulf %3, %4 : vector<8x256xf32>
    %c17_i32_5 = arith.constant 17 : i32
    %6 = tpu.dynamic_rotate %1 by %c17_i32_5 dim 1 : vector<8x256xf32>, i32 -> vector<8x256xf32>
    %7 = vector.broadcast %2 : vector<1x256xf32> to vector<8x256xf32>
    %8 = arith.mulf %6, %7 : vector<8x256xf32>
    %c1 = arith.constant 1 : index
    %c0_6 = arith.constant 0 : index
    %9 = vector.load %arg3[%c1, %c0_6] : memref<33x256xf32, #tpu.memory_space<vmem>>, vector<1x256xf32>
    %c16_i32 = arith.constant 16 : i32
    %10 = tpu.dynamic_rotate %0 by %c16_i32 dim 1 : vector<8x256xf32>, i32 -> vector<8x256xf32>
    %11 = vector.broadcast %9 : vector<1x256xf32> to vector<8x256xf32>
    %12 = arith.mulf %10, %11 : vector<8x256xf32>
    %c16_i32_7 = arith.constant 16 : i32
    %13 = tpu.dynamic_rotate %1 by %c16_i32_7 dim 1 : vector<8x256xf32>, i32 -> vector<8x256xf32>
    %14 = vector.broadcast %9 : vector<1x256xf32> to vector<8x256xf32>
    %15 = arith.mulf %13, %14 : vector<8x256xf32>
    %c2 = arith.constant 2 : index
    %c0_8 = arith.constant 0 : index
    %16 = vector.load %arg3[%c2, %c0_8] : memref<33x256xf32, #tpu.memory_space<vmem>>, vector<1x256xf32>
    %c15_i32 = arith.constant 15 : i32
    %17 = tpu.dynamic_rotate %0 by %c15_i32 dim 1 : vector<8x256xf32>, i32 -> vector<8x256xf32>
    %18 = vector.broadcast %16 : vector<1x256xf32> to vector<8x256xf32>
    %19 = arith.mulf %17, %18 : vector<8x256xf32>
    %c15_i32_9 = arith.constant 15 : i32
    %20 = tpu.dynamic_rotate %1 by %c15_i32_9 dim 1 : vector<8x256xf32>, i32 -> vector<8x256xf32>
    %21 = vector.broadcast %16 : vector<1x256xf32> to vector<8x256xf32>
    %22 = arith.mulf %20, %21 : vector<8x256xf32>
    %c3 = arith.constant 3 : index
    %c0_10 = arith.constant 0 : index
    %23 = vector.load %arg3[%c3, %c0_10] : memref<33x256xf32, #tpu.memory_space<vmem>>, vector<1x256xf32>
    %c1_i32 = arith.constant 1 : i32
    %24 = tpu.dynamic_rotate %0 by %c1_i32 dim 1 : vector<8x256xf32>, i32 -> vector<8x256xf32>
    %25 = vector.broadcast %23 : vector<1x256xf32> to vector<8x256xf32>
    %26 = arith.mulf %24, %25 : vector<8x256xf32>
    %c1_i32_11 = arith.constant 1 : i32
    %27 = tpu.dynamic_rotate %1 by %c1_i32_11 dim 1 : vector<8x256xf32>, i32 -> vector<8x256xf32>
    %28 = vector.broadcast %23 : vector<1x256xf32> to vector<8x256xf32>
    %29 = arith.mulf %27, %28 : vector<8x256xf32>
    %c5 = arith.constant 5 : index
    %c0_12 = arith.constant 0 : index
    %30 = vector.load %arg3[%c5, %c0_12] : memref<33x256xf32, #tpu.memory_space<vmem>>, vector<1x256xf32>
    %c255_i32 = arith.constant 255 : i32
    %31 = tpu.dynamic_rotate %0 by %c255_i32 dim 1 : vector<8x256xf32>, i32 -> vector<8x256xf32>
    %32 = vector.broadcast %30 : vector<1x256xf32> to vector<8x256xf32>
    %33 = arith.mulf %31, %32 : vector<8x256xf32>
    %c255_i32_13 = arith.constant 255 : i32
    %34 = tpu.dynamic_rotate %1 by %c255_i32_13 dim 1 : vector<8x256xf32>, i32 -> vector<8x256xf32>
    %35 = vector.broadcast %30 : vector<1x256xf32> to vector<8x256xf32>
    %36 = arith.mulf %34, %35 : vector<8x256xf32>
    %c6 = arith.constant 6 : index
    %c0_14 = arith.constant 0 : index
    %37 = vector.load %arg3[%c6, %c0_14] : memref<33x256xf32, #tpu.memory_space<vmem>>, vector<1x256xf32>
    %c241_i32 = arith.constant 241 : i32
    %38 = tpu.dynamic_rotate %0 by %c241_i32 dim 1 : vector<8x256xf32>, i32 -> vector<8x256xf32>
    %39 = vector.broadcast %37 : vector<1x256xf32> to vector<8x256xf32>
    %40 = arith.mulf %38, %39 : vector<8x256xf32>
    %c241_i32_15 = arith.constant 241 : i32
    %41 = tpu.dynamic_rotate %1 by %c241_i32_15 dim 1 : vector<8x256xf32>, i32 -> vector<8x256xf32>
    %42 = vector.broadcast %37 : vector<1x256xf32> to vector<8x256xf32>
    %43 = arith.mulf %41, %42 : vector<8x256xf32>
    %c7 = arith.constant 7 : index
    %c0_16 = arith.constant 0 : index
    %44 = vector.load %arg3[%c7, %c0_16] : memref<33x256xf32, #tpu.memory_space<vmem>>, vector<1x256xf32>
    %c240_i32 = arith.constant 240 : i32
    %45 = tpu.dynamic_rotate %0 by %c240_i32 dim 1 : vector<8x256xf32>, i32 -> vector<8x256xf32>
    %46 = vector.broadcast %44 : vector<1x256xf32> to vector<8x256xf32>
    %47 = arith.mulf %45, %46 : vector<8x256xf32>
    %c240_i32_17 = arith.constant 240 : i32
    %48 = tpu.dynamic_rotate %1 by %c240_i32_17 dim 1 : vector<8x256xf32>, i32 -> vector<8x256xf32>
    %49 = vector.broadcast %44 : vector<1x256xf32> to vector<8x256xf32>
    %50 = arith.mulf %48, %49 : vector<8x256xf32>
    %c8 = arith.constant 8 : index
    %c0_18 = arith.constant 0 : index
    %51 = vector.load %arg3[%c8, %c0_18] : memref<33x256xf32, #tpu.memory_space<vmem>>, vector<1x256xf32>
    %c239_i32 = arith.constant 239 : i32
    %52 = tpu.dynamic_rotate %0 by %c239_i32 dim 1 : vector<8x256xf32>, i32 -> vector<8x256xf32>
    %53 = vector.broadcast %51 : vector<1x256xf32> to vector<8x256xf32>
    %54 = arith.mulf %52, %53 : vector<8x256xf32>
    %c239_i32_19 = arith.constant 239 : i32
    %55 = tpu.dynamic_rotate %1 by %c239_i32_19 dim 1 : vector<8x256xf32>, i32 -> vector<8x256xf32>
    %56 = vector.broadcast %51 : vector<1x256xf32> to vector<8x256xf32>
    %57 = arith.mulf %55, %56 : vector<8x256xf32>
    %c9 = arith.constant 9 : index
    %c0_20 = arith.constant 0 : index
    %58 = vector.load %arg3[%c9, %c0_20] : memref<33x256xf32, #tpu.memory_space<vmem>>, vector<1x256xf32>
    %c34_i32 = arith.constant 34 : i32
    %59 = tpu.dynamic_rotate %0 by %c34_i32 dim 1 : vector<8x256xf32>, i32 -> vector<8x256xf32>
    %60 = vector.broadcast %58 : vector<1x256xf32> to vector<8x256xf32>
    %61 = arith.mulf %59, %60 : vector<8x256xf32>
    %c34_i32_21 = arith.constant 34 : i32
    %62 = tpu.dynamic_rotate %1 by %c34_i32_21 dim 1 : vector<8x256xf32>, i32 -> vector<8x256xf32>
    %63 = vector.broadcast %58 : vector<1x256xf32> to vector<8x256xf32>
    %64 = arith.mulf %62, %63 : vector<8x256xf32>
    %c10 = arith.constant 10 : index
    %c0_22 = arith.constant 0 : index
    %65 = vector.load %arg3[%c10, %c0_22] : memref<33x256xf32, #tpu.memory_space<vmem>>, vector<1x256xf32>
    %c32_i32 = arith.constant 32 : i32
    %66 = tpu.dynamic_rotate %0 by %c32_i32 dim 1 : vector<8x256xf32>, i32 -> vector<8x256xf32>
    %67 = vector.broadcast %65 : vector<1x256xf32> to vector<8x256xf32>
    %68 = arith.mulf %66, %67 : vector<8x256xf32>
    %c32_i32_23 = arith.constant 32 : i32
    %69 = tpu.dynamic_rotate %1 by %c32_i32_23 dim 1 : vector<8x256xf32>, i32 -> vector<8x256xf32>
    %70 = vector.broadcast %65 : vector<1x256xf32> to vector<8x256xf32>
    %71 = arith.mulf %69, %70 : vector<8x256xf32>
    %c11 = arith.constant 11 : index
    %c0_24 = arith.constant 0 : index
    %72 = vector.load %arg3[%c11, %c0_24] : memref<33x256xf32, #tpu.memory_space<vmem>>, vector<1x256xf32>
    %c30_i32 = arith.constant 30 : i32
    %73 = tpu.dynamic_rotate %0 by %c30_i32 dim 1 : vector<8x256xf32>, i32 -> vector<8x256xf32>
    %74 = vector.broadcast %72 : vector<1x256xf32> to vector<8x256xf32>
    %75 = arith.mulf %73, %74 : vector<8x256xf32>
    %c30_i32_25 = arith.constant 30 : i32
    %76 = tpu.dynamic_rotate %1 by %c30_i32_25 dim 1 : vector<8x256xf32>, i32 -> vector<8x256xf32>
    %77 = vector.broadcast %72 : vector<1x256xf32> to vector<8x256xf32>
    %78 = arith.mulf %76, %77 : vector<8x256xf32>
    %c12 = arith.constant 12 : index
    %c0_26 = arith.constant 0 : index
    %79 = vector.load %arg3[%c12, %c0_26] : memref<33x256xf32, #tpu.memory_space<vmem>>, vector<1x256xf32>
    %c2_i32 = arith.constant 2 : i32
    %80 = tpu.dynamic_rotate %0 by %c2_i32 dim 1 : vector<8x256xf32>, i32 -> vector<8x256xf32>
    %81 = vector.broadcast %79 : vector<1x256xf32> to vector<8x256xf32>
    %82 = arith.mulf %80, %81 : vector<8x256xf32>
    %c2_i32_27 = arith.constant 2 : i32
    %83 = tpu.dynamic_rotate %1 by %c2_i32_27 dim 1 : vector<8x256xf32>, i32 -> vector<8x256xf32>
    %84 = vector.broadcast %79 : vector<1x256xf32> to vector<8x256xf32>
    %85 = arith.mulf %83, %84 : vector<8x256xf32>
    %c13 = arith.constant 13 : index
    %c0_28 = arith.constant 0 : index
    %86 = vector.load %arg3[%c13, %c0_28] : memref<33x256xf32, #tpu.memory_space<vmem>>, vector<1x256xf32>
    %c254_i32 = arith.constant 254 : i32
    %87 = tpu.dynamic_rotate %0 by %c254_i32 dim 1 : vector<8x256xf32>, i32 -> vector<8x256xf32>
    %88 = vector.broadcast %86 : vector<1x256xf32> to vector<8x256xf32>
    %89 = arith.mulf %87, %88 : vector<8x256xf32>
    %c254_i32_29 = arith.constant 254 : i32
    %90 = tpu.dynamic_rotate %1 by %c254_i32_29 dim 1 : vector<8x256xf32>, i32 -> vector<8x256xf32>
    %91 = vector.broadcast %86 : vector<1x256xf32> to vector<8x256xf32>
    %92 = arith.mulf %90, %91 : vector<8x256xf32>
    %c14 = arith.constant 14 : index
    %c0_30 = arith.constant 0 : index
    %93 = vector.load %arg3[%c14, %c0_30] : memref<33x256xf32, #tpu.memory_space<vmem>>, vector<1x256xf32>
    %c226_i32 = arith.constant 226 : i32
    %94 = tpu.dynamic_rotate %0 by %c226_i32 dim 1 : vector<8x256xf32>, i32 -> vector<8x256xf32>
    %95 = vector.broadcast %93 : vector<1x256xf32> to vector<8x256xf32>
    %96 = arith.mulf %94, %95 : vector<8x256xf32>
    %c226_i32_31 = arith.constant 226 : i32
    %97 = tpu.dynamic_rotate %1 by %c226_i32_31 dim 1 : vector<8x256xf32>, i32 -> vector<8x256xf32>
    %98 = vector.broadcast %93 : vector<1x256xf32> to vector<8x256xf32>
    %99 = arith.mulf %97, %98 : vector<8x256xf32>
    %c15 = arith.constant 15 : index
    %c0_32 = arith.constant 0 : index
    %100 = vector.load %arg3[%c15, %c0_32] : memref<33x256xf32, #tpu.memory_space<vmem>>, vector<1x256xf32>
    %c224_i32 = arith.constant 224 : i32
    %101 = tpu.dynamic_rotate %0 by %c224_i32 dim 1 : vector<8x256xf32>, i32 -> vector<8x256xf32>
    %102 = vector.broadcast %100 : vector<1x256xf32> to vector<8x256xf32>
    %103 = arith.mulf %101, %102 : vector<8x256xf32>
    %c224_i32_33 = arith.constant 224 : i32
    %104 = tpu.dynamic_rotate %1 by %c224_i32_33 dim 1 : vector<8x256xf32>, i32 -> vector<8x256xf32>
    %105 = vector.broadcast %100 : vector<1x256xf32> to vector<8x256xf32>
    %106 = arith.mulf %104, %105 : vector<8x256xf32>
    %c16 = arith.constant 16 : index
    %c0_34 = arith.constant 0 : index
    %107 = vector.load %arg3[%c16, %c0_34] : memref<33x256xf32, #tpu.memory_space<vmem>>, vector<1x256xf32>
    %c222_i32 = arith.constant 222 : i32
    %108 = tpu.dynamic_rotate %0 by %c222_i32 dim 1 : vector<8x256xf32>, i32 -> vector<8x256xf32>
    %109 = vector.broadcast %107 : vector<1x256xf32> to vector<8x256xf32>
    %110 = arith.mulf %108, %109 : vector<8x256xf32>
    %c222_i32_35 = arith.constant 222 : i32
    %111 = tpu.dynamic_rotate %1 by %c222_i32_35 dim 1 : vector<8x256xf32>, i32 -> vector<8x256xf32>
    %112 = vector.broadcast %107 : vector<1x256xf32> to vector<8x256xf32>
    %113 = arith.mulf %111, %112 : vector<8x256xf32>
    %c17 = arith.constant 17 : index
    %c0_36 = arith.constant 0 : index
    %114 = vector.load %arg3[%c17, %c0_36] : memref<33x256xf32, #tpu.memory_space<vmem>>, vector<1x256xf32>
    %c51_i32 = arith.constant 51 : i32
    %115 = tpu.dynamic_rotate %0 by %c51_i32 dim 1 : vector<8x256xf32>, i32 -> vector<8x256xf32>
    %116 = vector.broadcast %114 : vector<1x256xf32> to vector<8x256xf32>
    %117 = arith.mulf %115, %116 : vector<8x256xf32>
    %c51_i32_37 = arith.constant 51 : i32
    %118 = tpu.dynamic_rotate %1 by %c51_i32_37 dim 1 : vector<8x256xf32>, i32 -> vector<8x256xf32>
    %119 = vector.broadcast %114 : vector<1x256xf32> to vector<8x256xf32>
    %120 = arith.mulf %118, %119 : vector<8x256xf32>
    %c18 = arith.constant 18 : index
    %c0_38 = arith.constant 0 : index
    %121 = vector.load %arg3[%c18, %c0_38] : memref<33x256xf32, #tpu.memory_space<vmem>>, vector<1x256xf32>
    %c48_i32 = arith.constant 48 : i32
    %122 = tpu.dynamic_rotate %0 by %c48_i32 dim 1 : vector<8x256xf32>, i32 -> vector<8x256xf32>
    %123 = vector.broadcast %121 : vector<1x256xf32> to vector<8x256xf32>
    %124 = arith.mulf %122, %123 : vector<8x256xf32>
    %c48_i32_39 = arith.constant 48 : i32
    %125 = tpu.dynamic_rotate %1 by %c48_i32_39 dim 1 : vector<8x256xf32>, i32 -> vector<8x256xf32>
    %126 = vector.broadcast %121 : vector<1x256xf32> to vector<8x256xf32>
    %127 = arith.mulf %125, %126 : vector<8x256xf32>
    %c19 = arith.constant 19 : index
    %c0_40 = arith.constant 0 : index
    %128 = vector.load %arg3[%c19, %c0_40] : memref<33x256xf32, #tpu.memory_space<vmem>>, vector<1x256xf32>
    %c45_i32 = arith.constant 45 : i32
    %129 = tpu.dynamic_rotate %0 by %c45_i32 dim 1 : vector<8x256xf32>, i32 -> vector<8x256xf32>
    %130 = vector.broadcast %128 : vector<1x256xf32> to vector<8x256xf32>
    %131 = arith.mulf %129, %130 : vector<8x256xf32>
    %c45_i32_41 = arith.constant 45 : i32
    %132 = tpu.dynamic_rotate %1 by %c45_i32_41 dim 1 : vector<8x256xf32>, i32 -> vector<8x256xf32>
    %133 = vector.broadcast %128 : vector<1x256xf32> to vector<8x256xf32>
    %134 = arith.mulf %132, %133 : vector<8x256xf32>
    %c20 = arith.constant 20 : index
    %c0_42 = arith.constant 0 : index
    %135 = vector.load %arg3[%c20, %c0_42] : memref<33x256xf32, #tpu.memory_space<vmem>>, vector<1x256xf32>
    %c3_i32 = arith.constant 3 : i32
    %136 = tpu.dynamic_rotate %0 by %c3_i32 dim 1 : vector<8x256xf32>, i32 -> vector<8x256xf32>
    %137 = vector.broadcast %135 : vector<1x256xf32> to vector<8x256xf32>
    %138 = arith.mulf %136, %137 : vector<8x256xf32>
    %c3_i32_43 = arith.constant 3 : i32
    %139 = tpu.dynamic_rotate %1 by %c3_i32_43 dim 1 : vector<8x256xf32>, i32 -> vector<8x256xf32>
    %140 = vector.broadcast %135 : vector<1x256xf32> to vector<8x256xf32>
    %141 = arith.mulf %139, %140 : vector<8x256xf32>
    %c21 = arith.constant 21 : index
    %c0_44 = arith.constant 0 : index
    %142 = vector.load %arg3[%c21, %c0_44] : memref<33x256xf32, #tpu.memory_space<vmem>>, vector<1x256xf32>
    %c253_i32 = arith.constant 253 : i32
    %143 = tpu.dynamic_rotate %0 by %c253_i32 dim 1 : vector<8x256xf32>, i32 -> vector<8x256xf32>
    %144 = vector.broadcast %142 : vector<1x256xf32> to vector<8x256xf32>
    %145 = arith.mulf %143, %144 : vector<8x256xf32>
    %c253_i32_45 = arith.constant 253 : i32
    %146 = tpu.dynamic_rotate %1 by %c253_i32_45 dim 1 : vector<8x256xf32>, i32 -> vector<8x256xf32>
    %147 = vector.broadcast %142 : vector<1x256xf32> to vector<8x256xf32>
    %148 = arith.mulf %146, %147 : vector<8x256xf32>
    %c22 = arith.constant 22 : index
    %c0_46 = arith.constant 0 : index
    %149 = vector.load %arg3[%c22, %c0_46] : memref<33x256xf32, #tpu.memory_space<vmem>>, vector<1x256xf32>
    %c211_i32 = arith.constant 211 : i32
    %150 = tpu.dynamic_rotate %0 by %c211_i32 dim 1 : vector<8x256xf32>, i32 -> vector<8x256xf32>
    %151 = vector.broadcast %149 : vector<1x256xf32> to vector<8x256xf32>
    %152 = arith.mulf %150, %151 : vector<8x256xf32>
    %c211_i32_47 = arith.constant 211 : i32
    %153 = tpu.dynamic_rotate %1 by %c211_i32_47 dim 1 : vector<8x256xf32>, i32 -> vector<8x256xf32>
    %154 = vector.broadcast %149 : vector<1x256xf32> to vector<8x256xf32>
    %155 = arith.mulf %153, %154 : vector<8x256xf32>
    %c23 = arith.constant 23 : index
    %c0_48 = arith.constant 0 : index
    %156 = vector.load %arg3[%c23, %c0_48] : memref<33x256xf32, #tpu.memory_space<vmem>>, vector<1x256xf32>
    %c208_i32 = arith.constant 208 : i32
    %157 = tpu.dynamic_rotate %0 by %c208_i32 dim 1 : vector<8x256xf32>, i32 -> vector<8x256xf32>
    %158 = vector.broadcast %156 : vector<1x256xf32> to vector<8x256xf32>
    %159 = arith.mulf %157, %158 : vector<8x256xf32>
    %c208_i32_49 = arith.constant 208 : i32
    %160 = tpu.dynamic_rotate %1 by %c208_i32_49 dim 1 : vector<8x256xf32>, i32 -> vector<8x256xf32>
    %161 = vector.broadcast %156 : vector<1x256xf32> to vector<8x256xf32>
    %162 = arith.mulf %160, %161 : vector<8x256xf32>
    %c24 = arith.constant 24 : index
    %c0_50 = arith.constant 0 : index
    %163 = vector.load %arg3[%c24, %c0_50] : memref<33x256xf32, #tpu.memory_space<vmem>>, vector<1x256xf32>
    %c205_i32 = arith.constant 205 : i32
    %164 = tpu.dynamic_rotate %0 by %c205_i32 dim 1 : vector<8x256xf32>, i32 -> vector<8x256xf32>
    %165 = vector.broadcast %163 : vector<1x256xf32> to vector<8x256xf32>
    %166 = arith.mulf %164, %165 : vector<8x256xf32>
    %c205_i32_51 = arith.constant 205 : i32
    %167 = tpu.dynamic_rotate %1 by %c205_i32_51 dim 1 : vector<8x256xf32>, i32 -> vector<8x256xf32>
    %168 = vector.broadcast %163 : vector<1x256xf32> to vector<8x256xf32>
    %169 = arith.mulf %167, %168 : vector<8x256xf32>
    %c25 = arith.constant 25 : index
    %c0_52 = arith.constant 0 : index
    %170 = vector.load %arg3[%c25, %c0_52] : memref<33x256xf32, #tpu.memory_space<vmem>>, vector<1x256xf32>
    %c68_i32 = arith.constant 68 : i32
    %171 = tpu.dynamic_rotate %0 by %c68_i32 dim 1 : vector<8x256xf32>, i32 -> vector<8x256xf32>
    %172 = vector.broadcast %170 : vector<1x256xf32> to vector<8x256xf32>
    %173 = arith.mulf %171, %172 : vector<8x256xf32>
    %c68_i32_53 = arith.constant 68 : i32
    %174 = tpu.dynamic_rotate %1 by %c68_i32_53 dim 1 : vector<8x256xf32>, i32 -> vector<8x256xf32>
    %175 = vector.broadcast %170 : vector<1x256xf32> to vector<8x256xf32>
    %176 = arith.mulf %174, %175 : vector<8x256xf32>
    %c26 = arith.constant 26 : index
    %c0_54 = arith.constant 0 : index
    %177 = vector.load %arg3[%c26, %c0_54] : memref<33x256xf32, #tpu.memory_space<vmem>>, vector<1x256xf32>
    %c64_i32 = arith.constant 64 : i32
    %178 = tpu.dynamic_rotate %0 by %c64_i32 dim 1 : vector<8x256xf32>, i32 -> vector<8x256xf32>
    %179 = vector.broadcast %177 : vector<1x256xf32> to vector<8x256xf32>
    %180 = arith.mulf %178, %179 : vector<8x256xf32>
    %c64_i32_55 = arith.constant 64 : i32
    %181 = tpu.dynamic_rotate %1 by %c64_i32_55 dim 1 : vector<8x256xf32>, i32 -> vector<8x256xf32>
    %182 = vector.broadcast %177 : vector<1x256xf32> to vector<8x256xf32>
    %183 = arith.mulf %181, %182 : vector<8x256xf32>
    %c27 = arith.constant 27 : index
    %c0_56 = arith.constant 0 : index
    %184 = vector.load %arg3[%c27, %c0_56] : memref<33x256xf32, #tpu.memory_space<vmem>>, vector<1x256xf32>
    %c60_i32 = arith.constant 60 : i32
    %185 = tpu.dynamic_rotate %0 by %c60_i32 dim 1 : vector<8x256xf32>, i32 -> vector<8x256xf32>
    %186 = vector.broadcast %184 : vector<1x256xf32> to vector<8x256xf32>
    %187 = arith.mulf %185, %186 : vector<8x256xf32>
    %c60_i32_57 = arith.constant 60 : i32
    %188 = tpu.dynamic_rotate %1 by %c60_i32_57 dim 1 : vector<8x256xf32>, i32 -> vector<8x256xf32>
    %189 = vector.broadcast %184 : vector<1x256xf32> to vector<8x256xf32>
    %190 = arith.mulf %188, %189 : vector<8x256xf32>
    %c28 = arith.constant 28 : index
    %c0_58 = arith.constant 0 : index
    %191 = vector.load %arg3[%c28, %c0_58] : memref<33x256xf32, #tpu.memory_space<vmem>>, vector<1x256xf32>
    %c4_i32 = arith.constant 4 : i32
    %192 = tpu.dynamic_rotate %0 by %c4_i32 dim 1 : vector<8x256xf32>, i32 -> vector<8x256xf32>
    %193 = vector.broadcast %191 : vector<1x256xf32> to vector<8x256xf32>
    %194 = arith.mulf %192, %193 : vector<8x256xf32>
    %c4_i32_59 = arith.constant 4 : i32
    %195 = tpu.dynamic_rotate %1 by %c4_i32_59 dim 1 : vector<8x256xf32>, i32 -> vector<8x256xf32>
    %196 = vector.broadcast %191 : vector<1x256xf32> to vector<8x256xf32>
    %197 = arith.mulf %195, %196 : vector<8x256xf32>
    %c29 = arith.constant 29 : index
    %c0_60 = arith.constant 0 : index
    %198 = vector.load %arg3[%c29, %c0_60] : memref<33x256xf32, #tpu.memory_space<vmem>>, vector<1x256xf32>
    %c252_i32 = arith.constant 252 : i32
    %199 = tpu.dynamic_rotate %0 by %c252_i32 dim 1 : vector<8x256xf32>, i32 -> vector<8x256xf32>
    %200 = vector.broadcast %198 : vector<1x256xf32> to vector<8x256xf32>
    %201 = arith.mulf %199, %200 : vector<8x256xf32>
    %c252_i32_61 = arith.constant 252 : i32
    %202 = tpu.dynamic_rotate %1 by %c252_i32_61 dim 1 : vector<8x256xf32>, i32 -> vector<8x256xf32>
    %203 = vector.broadcast %198 : vector<1x256xf32> to vector<8x256xf32>
    %204 = arith.mulf %202, %203 : vector<8x256xf32>
    %c30 = arith.constant 30 : index
    %c0_62 = arith.constant 0 : index
    %205 = vector.load %arg3[%c30, %c0_62] : memref<33x256xf32, #tpu.memory_space<vmem>>, vector<1x256xf32>
    %c196_i32 = arith.constant 196 : i32
    %206 = tpu.dynamic_rotate %0 by %c196_i32 dim 1 : vector<8x256xf32>, i32 -> vector<8x256xf32>
    %207 = vector.broadcast %205 : vector<1x256xf32> to vector<8x256xf32>
    %208 = arith.mulf %206, %207 : vector<8x256xf32>
    %c196_i32_63 = arith.constant 196 : i32
    %209 = tpu.dynamic_rotate %1 by %c196_i32_63 dim 1 : vector<8x256xf32>, i32 -> vector<8x256xf32>
    %210 = vector.broadcast %205 : vector<1x256xf32> to vector<8x256xf32>
    %211 = arith.mulf %209, %210 : vector<8x256xf32>
    %c31 = arith.constant 31 : index
    %c0_64 = arith.constant 0 : index
    %212 = vector.load %arg3[%c31, %c0_64] : memref<33x256xf32, #tpu.memory_space<vmem>>, vector<1x256xf32>
    %c192_i32 = arith.constant 192 : i32
    %213 = tpu.dynamic_rotate %0 by %c192_i32 dim 1 : vector<8x256xf32>, i32 -> vector<8x256xf32>
    %214 = vector.broadcast %212 : vector<1x256xf32> to vector<8x256xf32>
    %215 = arith.mulf %213, %214 : vector<8x256xf32>
    %c192_i32_65 = arith.constant 192 : i32
    %216 = tpu.dynamic_rotate %1 by %c192_i32_65 dim 1 : vector<8x256xf32>, i32 -> vector<8x256xf32>
    %217 = vector.broadcast %212 : vector<1x256xf32> to vector<8x256xf32>
    %218 = arith.mulf %216, %217 : vector<8x256xf32>
    %c32 = arith.constant 32 : index
    %c0_66 = arith.constant 0 : index
    %219 = vector.load %arg3[%c32, %c0_66] : memref<33x256xf32, #tpu.memory_space<vmem>>, vector<1x256xf32>
    %c188_i32 = arith.constant 188 : i32
    %220 = tpu.dynamic_rotate %0 by %c188_i32 dim 1 : vector<8x256xf32>, i32 -> vector<8x256xf32>
    %221 = vector.broadcast %219 : vector<1x256xf32> to vector<8x256xf32>
    %222 = arith.mulf %220, %221 : vector<8x256xf32>
    %c188_i32_67 = arith.constant 188 : i32
    %223 = tpu.dynamic_rotate %1 by %c188_i32_67 dim 1 : vector<8x256xf32>, i32 -> vector<8x256xf32>
    %224 = vector.broadcast %219 : vector<1x256xf32> to vector<8x256xf32>
    %225 = arith.mulf %223, %224 : vector<8x256xf32>
    %226 = tpu.concatenate %5, %8, %12, %15, %19, %22, %26, %29, %0, %1, %33, %36, %40, %43, %47, %50 in 0 : vector<8x256xf32>, vector<8x256xf32>, vector<8x256xf32>, vector<8x256xf32>, vector<8x256xf32>, vector<8x256xf32>, vector<8x256xf32>, vector<8x256xf32>, vector<8x256xf32>, vector<8x256xf32>, vector<8x256xf32>, vector<8x256xf32>, vector<8x256xf32>, vector<8x256xf32>, vector<8x256xf32>, vector<8x256xf32> -> vector<128x256xf32>
    %227 = tpu.concatenate %54, %57, %61, %64, %68, %71, %75, %78, %82, %85, %89, %92, %96, %99, %103, %106 in 0 : vector<8x256xf32>, vector<8x256xf32>, vector<8x256xf32>, vector<8x256xf32>, vector<8x256xf32>, vector<8x256xf32>, vector<8x256xf32>, vector<8x256xf32>, vector<8x256xf32>, vector<8x256xf32>, vector<8x256xf32>, vector<8x256xf32>, vector<8x256xf32>, vector<8x256xf32>, vector<8x256xf32>, vector<8x256xf32> -> vector<128x256xf32>
    %228 = tpu.concatenate %110, %113, %117, %120, %124, %127, %131, %134, %138, %141, %145, %148, %152, %155, %159, %162 in 0 : vector<8x256xf32>, vector<8x256xf32>, vector<8x256xf32>, vector<8x256xf32>, vector<8x256xf32>, vector<8x256xf32>, vector<8x256xf32>, vector<8x256xf32>, vector<8x256xf32>, vector<8x256xf32>, vector<8x256xf32>, vector<8x256xf32>, vector<8x256xf32>, vector<8x256xf32>, vector<8x256xf32>, vector<8x256xf32> -> vector<128x256xf32>
    %229 = tpu.concatenate %166, %169, %173, %176, %180, %183, %187, %190, %194, %197, %201, %204, %208, %211, %215, %218 in 0 : vector<8x256xf32>, vector<8x256xf32>, vector<8x256xf32>, vector<8x256xf32>, vector<8x256xf32>, vector<8x256xf32>, vector<8x256xf32>, vector<8x256xf32>, vector<8x256xf32>, vector<8x256xf32>, vector<8x256xf32>, vector<8x256xf32>, vector<8x256xf32>, vector<8x256xf32>, vector<8x256xf32>, vector<8x256xf32> -> vector<128x256xf32>
    %230 = tpu.concatenate %222, %225 in 0 : vector<8x256xf32>, vector<8x256xf32> -> vector<16x256xf32>
    %231 = tpu.concatenate %226, %227, %228, %229, %230 in 0 : vector<128x256xf32>, vector<128x256xf32>, vector<128x256xf32>, vector<128x256xf32>, vector<16x256xf32> -> vector<528x256xf32>
    %232 = arith.truncf %231 : vector<528x256xf32> to vector<528x256xbf16>
    %c0_68 = arith.constant 0 : index
    %c0_69 = arith.constant 0 : index
    %233 = vector.load %arg4[%c0_68, %c0_69] : memref<8x528xbf16, #tpu.memory_space<vmem>>, vector<8x528xbf16>
    %cst = arith.constant dense<0.000000e+00> : vector<8x256xf32>
    %234 = tpu.matmul %233, %232, %cst {dimension_numbers = #tpu.dot_dimension_numbers<[1], [0], [0], [1], [0, 0, 1, 1], [], []>} : vector<8x528xbf16>, vector<528x256xbf16>, vector<8x256xf32> -> vector<8x256xf32>
    %c0_70 = arith.constant 0 : index
    %c0_71 = arith.constant 0 : index
    %235 = vector.load %arg5[%c0_70, %c0_71] : memref<8x1xf32, #tpu.memory_space<vmem>>, vector<8x1xf32>
    %236 = vector.broadcast %235 : vector<8x1xf32> to vector<8x256xf32>
    %237 = arith.addf %234, %236 : vector<8x256xf32>
    %cst_72 = arith.constant 0.000000e+00 : f32
    %238 = vector.broadcast %cst_72 : f32 to vector<8x256xf32>
    %239 = arith.maximumf %237, %238 : vector<8x256xf32>
    %cst_73 = arith.constant dense<0.000000e+00> : vector<8xf32>
    %240 = vector.multi_reduction <add>, %0, %cst_73 [1] : vector<8x256xf32> to vector<8xf32>
    %241 = vector.shape_cast %240 : vector<8xf32> to vector<8x1xf32>
    %cst_74 = arith.constant 2.560000e+02 : f32
    %242 = vector.broadcast %cst_74 : f32 to vector<8x1xf32>
    %243 = arith.divf %241, %242 : vector<8x1xf32>
    %244 = vector.broadcast %243 : vector<8x1xf32> to vector<8x256xf32>
    %245 = arith.subf %0, %244 : vector<8x256xf32>
    %246 = arith.mulf %245, %245 : vector<8x256xf32>
    %cst_75 = arith.constant dense<0.000000e+00> : vector<8xf32>
    %247 = vector.multi_reduction <add>, %246, %cst_75 [1] : vector<8x256xf32> to vector<8xf32>
    %248 = vector.shape_cast %247 : vector<8xf32> to vector<8x1xf32>
    %cst_76 = arith.constant 0.00392156886 : f32
    %249 = vector.broadcast %cst_76 : f32 to vector<8x1xf32>
    %250 = arith.mulf %248, %249 : vector<8x1xf32>
    %cst_77 = arith.constant 9.99999974E-5 : f32
    %251 = vector.broadcast %cst_77 : f32 to vector<8x1xf32>
    %252 = arith.addf %250, %251 : vector<8x1xf32>
    %cst_78 = arith.constant 4.000000e+00 : f32
    %253 = vector.broadcast %cst_78 : f32 to vector<8x1xf32>
    %254 = arith.mulf %253, %252 : vector<8x1xf32>
    %255 = tpu.reciprocal %254 {approx = true} : vector<8x1xf32> -> vector<8x1xf32>
    %256 = vector.broadcast %255 : vector<8x1xf32> to vector<8x256xf32>
    %257 = arith.mulf %246, %256 : vector<8x256xf32>
    %cst_79 = arith.constant 5.000000e-01 : f32
    %258 = vector.broadcast %cst_79 : f32 to vector<8x256xf32>
    %259 = arith.addf %257, %258 : vector<8x256xf32>
    %260 = arith.negf %259 : vector<8x256xf32>
    %261 = math.exp %260 : vector<8x256xf32>
    %cst_80 = arith.constant 1.000000e+00 : f32
    %262 = vector.broadcast %cst_80 : f32 to vector<8x256xf32>
    %263 = arith.addf %262, %261 : vector<8x256xf32>
    %264 = arith.divf %262, %263 : vector<8x256xf32>
    %265 = arith.mulf %0, %264 : vector<8x256xf32>
    %cst_81 = arith.constant dense<0.000000e+00> : vector<8xf32>
    %266 = vector.multi_reduction <add>, %1, %cst_81 [1] : vector<8x256xf32> to vector<8xf32>
    %267 = vector.shape_cast %266 : vector<8xf32> to vector<8x1xf32>
    %cst_82 = arith.constant 2.560000e+02 : f32
    %268 = vector.broadcast %cst_82 : f32 to vector<8x1xf32>
    %269 = arith.divf %267, %268 : vector<8x1xf32>
    %270 = vector.broadcast %269 : vector<8x1xf32> to vector<8x256xf32>
    %271 = arith.subf %1, %270 : vector<8x256xf32>
    %272 = arith.mulf %271, %271 : vector<8x256xf32>
    %cst_83 = arith.constant dense<0.000000e+00> : vector<8xf32>
    %273 = vector.multi_reduction <add>, %272, %cst_83 [1] : vector<8x256xf32> to vector<8xf32>
    %274 = vector.shape_cast %273 : vector<8xf32> to vector<8x1xf32>
    %cst_84 = arith.constant 0.00392156886 : f32
    %275 = vector.broadcast %cst_84 : f32 to vector<8x1xf32>
    %276 = arith.mulf %274, %275 : vector<8x1xf32>
    %cst_85 = arith.constant 9.99999974E-5 : f32
    %277 = vector.broadcast %cst_85 : f32 to vector<8x1xf32>
    %278 = arith.addf %276, %277 : vector<8x1xf32>
    %cst_86 = arith.constant 4.000000e+00 : f32
    %279 = vector.broadcast %cst_86 : f32 to vector<8x1xf32>
    %280 = arith.mulf %279, %278 : vector<8x1xf32>
    %281 = tpu.reciprocal %280 {approx = true} : vector<8x1xf32> -> vector<8x1xf32>
    %282 = vector.broadcast %281 : vector<8x1xf32> to vector<8x256xf32>
    %283 = arith.mulf %272, %282 : vector<8x256xf32>
    %cst_87 = arith.constant 5.000000e-01 : f32
    %284 = vector.broadcast %cst_87 : f32 to vector<8x256xf32>
    %285 = arith.addf %283, %284 : vector<8x256xf32>
    %286 = arith.negf %285 : vector<8x256xf32>
    %287 = math.exp %286 : vector<8x256xf32>
    %cst_88 = arith.constant 1.000000e+00 : f32
    %288 = vector.broadcast %cst_88 : f32 to vector<8x256xf32>
    %289 = arith.addf %288, %287 : vector<8x256xf32>
    %290 = arith.divf %288, %289 : vector<8x256xf32>
    %291 = arith.mulf %1, %290 : vector<8x256xf32>
    %cst_89 = arith.constant dense<0.000000e+00> : vector<8xf32>
    %292 = vector.multi_reduction <add>, %239, %cst_89 [1] : vector<8x256xf32> to vector<8xf32>
    %293 = vector.shape_cast %292 : vector<8xf32> to vector<8x1xf32>
    %cst_90 = arith.constant 2.560000e+02 : f32
    %294 = vector.broadcast %cst_90 : f32 to vector<8x1xf32>
    %295 = arith.divf %293, %294 : vector<8x1xf32>
    %296 = vector.broadcast %295 : vector<8x1xf32> to vector<8x256xf32>
    %297 = arith.subf %239, %296 : vector<8x256xf32>
    %298 = arith.mulf %297, %297 : vector<8x256xf32>
    %cst_91 = arith.constant dense<0.000000e+00> : vector<8xf32>
    %299 = vector.multi_reduction <add>, %298, %cst_91 [1] : vector<8x256xf32> to vector<8xf32>
    %300 = vector.shape_cast %299 : vector<8xf32> to vector<8x1xf32>
    %cst_92 = arith.constant 0.00392156886 : f32
    %301 = vector.broadcast %cst_92 : f32 to vector<8x1xf32>
    %302 = arith.mulf %300, %301 : vector<8x1xf32>
    %cst_93 = arith.constant 9.99999974E-5 : f32
    %303 = vector.broadcast %cst_93 : f32 to vector<8x1xf32>
    %304 = arith.addf %302, %303 : vector<8x1xf32>
    %cst_94 = arith.constant 4.000000e+00 : f32
    %305 = vector.broadcast %cst_94 : f32 to vector<8x1xf32>
    %306 = arith.mulf %305, %304 : vector<8x1xf32>
    %307 = tpu.reciprocal %306 {approx = true} : vector<8x1xf32> -> vector<8x1xf32>
    %308 = vector.broadcast %307 : vector<8x1xf32> to vector<8x256xf32>
    %309 = arith.mulf %298, %308 : vector<8x256xf32>
    %cst_95 = arith.constant 5.000000e-01 : f32
    %310 = vector.broadcast %cst_95 : f32 to vector<8x256xf32>
    %311 = arith.addf %309, %310 : vector<8x256xf32>
    %312 = arith.negf %311 : vector<8x256xf32>
    %313 = math.exp %312 : vector<8x256xf32>
    %cst_96 = arith.constant 1.000000e+00 : f32
    %314 = vector.broadcast %cst_96 : f32 to vector<8x256xf32>
    %315 = arith.addf %314, %313 : vector<8x256xf32>
    %316 = arith.divf %314, %315 : vector<8x256xf32>
    %317 = arith.mulf %239, %316 : vector<8x256xf32>
    %318 = arith.addf %317, %0 : vector<8x256xf32>
    %319 = arith.addf %318, %1 : vector<8x256xf32>
    %320 = arith.addf %265, %291 : vector<8x256xf32>
    %321 = arith.mulf %320, %239 : vector<8x256xf32>
    %322 = arith.addf %319, %321 : vector<8x256xf32>
    %c17_i32_97 = arith.constant 17 : i32
    %323 = tpu.dynamic_rotate %322 by %c17_i32_97 dim 1 : vector<8x256xf32>, i32 -> vector<8x256xf32>
    %324 = vector.broadcast %2 : vector<1x256xf32> to vector<8x256xf32>
    %325 = arith.mulf %323, %324 : vector<8x256xf32>
    %c16_i32_98 = arith.constant 16 : i32
    %326 = tpu.dynamic_rotate %322 by %c16_i32_98 dim 1 : vector<8x256xf32>, i32 -> vector<8x256xf32>
    %327 = vector.broadcast %9 : vector<1x256xf32> to vector<8x256xf32>
    %328 = arith.mulf %326, %327 : vector<8x256xf32>
    %c15_i32_99 = arith.constant 15 : i32
    %329 = tpu.dynamic_rotate %322 by %c15_i32_99 dim 1 : vector<8x256xf32>, i32 -> vector<8x256xf32>
    %330 = vector.broadcast %16 : vector<1x256xf32> to vector<8x256xf32>
    %331 = arith.mulf %329, %330 : vector<8x256xf32>
    %c1_i32_100 = arith.constant 1 : i32
    %332 = tpu.dynamic_rotate %322 by %c1_i32_100 dim 1 : vector<8x256xf32>, i32 -> vector<8x256xf32>
    %333 = vector.broadcast %23 : vector<1x256xf32> to vector<8x256xf32>
    %334 = arith.mulf %332, %333 : vector<8x256xf32>
    %c255_i32_101 = arith.constant 255 : i32
    %335 = tpu.dynamic_rotate %322 by %c255_i32_101 dim 1 : vector<8x256xf32>, i32 -> vector<8x256xf32>
    %336 = vector.broadcast %30 : vector<1x256xf32> to vector<8x256xf32>
    %337 = arith.mulf %335, %336 : vector<8x256xf32>
    %c241_i32_102 = arith.constant 241 : i32
    %338 = tpu.dynamic_rotate %322 by %c241_i32_102 dim 1 : vector<8x256xf32>, i32 -> vector<8x256xf32>
    %339 = vector.broadcast %37 : vector<1x256xf32> to vector<8x256xf32>
    %340 = arith.mulf %338, %339 : vector<8x256xf32>
    %c240_i32_103 = arith.constant 240 : i32
    %341 = tpu.dynamic_rotate %322 by %c240_i32_103 dim 1 : vector<8x256xf32>, i32 -> vector<8x256xf32>
    %342 = vector.broadcast %44 : vector<1x256xf32> to vector<8x256xf32>
    %343 = arith.mulf %341, %342 : vector<8x256xf32>
    %c239_i32_104 = arith.constant 239 : i32
    %344 = tpu.dynamic_rotate %322 by %c239_i32_104 dim 1 : vector<8x256xf32>, i32 -> vector<8x256xf32>
    %345 = vector.broadcast %51 : vector<1x256xf32> to vector<8x256xf32>
    %346 = arith.mulf %344, %345 : vector<8x256xf32>
    %347 = tpu.concatenate %325, %328, %331, %334, %322, %337, %340, %343, %346 in 0 : vector<8x256xf32>, vector<8x256xf32>, vector<8x256xf32>, vector<8x256xf32>, vector<8x256xf32>, vector<8x256xf32>, vector<8x256xf32>, vector<8x256xf32>, vector<8x256xf32> -> vector<72x256xf32>
    %348 = arith.truncf %347 : vector<72x256xf32> to vector<72x256xbf16>
    %c0_105 = arith.constant 0 : index
    %c0_106 = arith.constant 0 : index
    %349 = vector.load %arg6[%c0_105, %c0_106] : memref<8x72xbf16, #tpu.memory_space<vmem>>, vector<8x72xbf16>
    %cst_107 = arith.constant dense<0.000000e+00> : vector<8x256xf32>
    %350 = tpu.matmul %349, %348, %cst_107 {dimension_numbers = #tpu.dot_dimension_numbers<[1], [0], [0], [1], [0, 0, 1, 1], [], []>} : vector<8x72xbf16>, vector<72x256xbf16>, vector<8x256xf32> -> vector<8x256xf32>
    %c0_108 = arith.constant 0 : index
    %c0_109 = arith.constant 0 : index
    %351 = vector.load %arg7[%c0_108, %c0_109] : memref<8x1xf32, #tpu.memory_space<vmem>>, vector<8x1xf32>
    %352 = vector.broadcast %351 : vector<8x1xf32> to vector<8x256xf32>
    %353 = arith.addf %350, %352 : vector<8x256xf32>
    %cst_110 = arith.constant 0.000000e+00 : f32
    %354 = vector.broadcast %cst_110 : f32 to vector<8x256xf32>
    %355 = arith.maximumf %353, %354 : vector<8x256xf32>
    %cst_111 = arith.constant dense<0.000000e+00> : vector<8xf32>
    %356 = vector.multi_reduction <add>, %355, %cst_111 [1] : vector<8x256xf32> to vector<8xf32>
    %357 = vector.shape_cast %356 : vector<8xf32> to vector<8x1xf32>
    %cst_112 = arith.constant 2.560000e+02 : f32
    %358 = vector.broadcast %cst_112 : f32 to vector<8x1xf32>
    %359 = arith.divf %357, %358 : vector<8x1xf32>
    %360 = vector.broadcast %359 : vector<8x1xf32> to vector<8x256xf32>
    %361 = arith.subf %355, %360 : vector<8x256xf32>
    %362 = arith.mulf %361, %361 : vector<8x256xf32>
    %cst_113 = arith.constant dense<0.000000e+00> : vector<8xf32>
    %363 = vector.multi_reduction <add>, %362, %cst_113 [1] : vector<8x256xf32> to vector<8xf32>
    %364 = vector.shape_cast %363 : vector<8xf32> to vector<8x1xf32>
    %cst_114 = arith.constant 0.00392156886 : f32
    %365 = vector.broadcast %cst_114 : f32 to vector<8x1xf32>
    %366 = arith.mulf %364, %365 : vector<8x1xf32>
    %cst_115 = arith.constant 9.99999974E-5 : f32
    %367 = vector.broadcast %cst_115 : f32 to vector<8x1xf32>
    %368 = arith.addf %366, %367 : vector<8x1xf32>
    %cst_116 = arith.constant 4.000000e+00 : f32
    %369 = vector.broadcast %cst_116 : f32 to vector<8x1xf32>
    %370 = arith.mulf %369, %368 : vector<8x1xf32>
    %371 = tpu.reciprocal %370 : vector<8x1xf32> -> vector<8x1xf32>
    %372 = vector.broadcast %371 : vector<8x1xf32> to vector<8x256xf32>
    %373 = arith.mulf %362, %372 : vector<8x256xf32>
    %cst_117 = arith.constant 5.000000e-01 : f32
    %374 = vector.broadcast %cst_117 : f32 to vector<8x256xf32>
    %375 = arith.addf %373, %374 : vector<8x256xf32>
    %376 = arith.negf %375 : vector<8x256xf32>
    %377 = math.exp %376 : vector<8x256xf32>
    %cst_118 = arith.constant 1.000000e+00 : f32
    %378 = vector.broadcast %cst_118 : f32 to vector<8x256xf32>
    %379 = arith.addf %378, %377 : vector<8x256xf32>
    %380 = arith.divf %378, %379 : vector<8x256xf32>
    %381 = arith.mulf %355, %380 : vector<8x256xf32>
    %c0_119 = arith.constant 0 : index
    %c0_120 = arith.constant 0 : index
    %382 = vector.load %arg8[%c0_119, %c0_120] : memref<8x256xf32, #tpu.memory_space<vmem>>, vector<8x256xf32>
    tpu.vector_store %arg8[%c0_119, %c0_120], %381 {strides = array<i32>} : memref<8x256xf32, #tpu.memory_space<vmem>>, vector<8x256xf32>,
    return
  }
  func.func @transform_0(%arg0: i32) -> (i32, i32) {
    %c0_i32 = arith.constant 0 : i32
    %c0_i32_0 = arith.constant 0 : i32
    %c0_i32_1 = arith.constant 0 : i32
    return %c0_i32, %c0_i32_0 : i32, i32
  }
  func.func @transform_1(%arg0: i32) -> (i32, i32) {
    %c0_i32 = arith.constant 0 : i32
    %c0_i32_0 = arith.constant 0 : i32
    %c0_i32_1 = arith.constant 0 : i32
    return %c0_i32, %c0_i32_0 : i32, i32
  }
  func.func @transform_2(%arg0: i32) -> (i32, i32) {
    %c0_i32 = arith.constant 0 : i32
    %c0_i32_0 = arith.constant 0 : i32
    %c0_i32_1 = arith.constant 0 : i32
    return %c0_i32, %c0_i32_0 : i32, i32
  }
  func.func @transform_3(%arg0: i32) -> (i32, i32) {
    %c0_i32 = arith.constant 0 : i32
    %c0_i32_0 = arith.constant 0 : i32
    %c0_i32_1 = arith.constant 0 : i32
    return %c0_i32, %c0_i32_0 : i32, i32
  }
  func.func @transform_4(%arg0: i32) -> (i32, i32) {
    %c0_i32 = arith.constant 0 : i32
    %c0_i32_0 = arith.constant 0 : i32
    %c0_i32_1 = arith.constant 0 : i32
    return %c0_i32, %c0_i32_0 : i32, i32
  }
  func.func @transform_5(%arg0: i32) -> (i32, i32) {
    %c0_i32 = arith.constant 0 : i32
    %c0_i32_0 = arith.constant 0 : i32
    %c0_i32_1 = arith.constant 0 : i32
    return %c0_i32, %c0_i32_0 : i32, i32
  }
  func.func @transform_6(%arg0: i32) -> (i32, i32) {
    %c0_i32 = arith.constant 0 : i32
    %c0_i32_0 = arith.constant 0 : i32
    %c0_i32_1 = arith.constant 0 : i32
    return %c0_i32, %c0_i32_0 : i32, i32
  }
  func.func @transform_7(%arg0: i32) -> (i32, i32) {
    %c0_i32 = arith.constant 0 : i32
    %c0_i32_0 = arith.constant 0 : i32
    %c0_i32_1 = arith.constant 0 : i32
    return %c0_i32, %c0_i32_0 : i32, i32
  }
}

</mosaic_0001>

<bundles_post_ra>
// kernel: forward.1
= control target key start
LH: loop header
LB: loop body
LE: loop exit
PB: predicated region body
PF: predicated region fallthrough
CT: control target
= control target key end

     0   :  { %s1503_s28 = smov 112   ;;  %s1504_s29 = smov 96   ;;  %v36_v4 = vlaneseq  ;;  %s2820_s1 = inlined_call_operand.vmem [shape: f32[8,256], index: 1, kind: input, shape index: {}]   ;;  %s2821_s0 = inlined_call_operand.vmem [shape: f32[8,256], index: 0, kind: input, shape index: {}]   ;;  %s2822_s2 = inlined_call_operand.vmem [shape: f32[33,256], index: 2, kind: input, shape index: {}]   ;;  %s2823_s3 = inlined_call_operand.vmem [shape: bf16[8,528], index: 3, kind: input, shape index: {}]   ;;  %s2824_s4 = inlined_call_operand.vmem [shape: f32[8,1], index: 4, kind: input, shape index: {}]   ;;  %s2825_s6 = inlined_call_operand.vmem [shape: f32[8,1], index: 6, kind: input, shape index: {}]   ;;  %s2826_s5 = inlined_call_operand.vmem [shape: bf16[8,72], index: 5, kind: input, shape index: {}]   ;;  %s2827_s7 = inlined_call_operand.vmem [shape: f32[8,256], index: 7, kind: output, shape index: {}]  }
   0x1   :  { %v1577_v0 = vld [vmem:[%s2820_s1] sm:$0xff]  ;;  %v1592_v2 = vld [vmem:[%s2820_s1 + $0x8] sm:$0xff]  ;;  %s1505_s11 = smov 113   ;;  %s1506_s12 = smov 98  }
   0x2   :  { %v1582_v1 = vld [vmem:[%s2821_s0] sm:$0xff]  ;;  %192 = vrot.lane.b32.xlu1 %v1577_v0, %s1503_s28  ;;  %v1597_v3 = vld [vmem:[%s2821_s0 + $0x8] sm:$0xff]  ;;  %s1507_s13 = smov 80   ;;  %s1508_s14 = smov 127   ;;  %v1642_v6 = vand.u32 127, %v36_v4 }
   0x3   :  { %178 = vrot.lane.b32.xlu0 %v1582_v1, %s1503_s28  ;;  %370 = vrot.lane.b32.xlu2 %v1582_v1, %s1504_s29  ;;  %s1509_s15 = smov 64   ;;  %s1510_s16 = smov 126   ;;  %v1394_v7 = vld [vmem:[%s2822_s2 + $0x17] ss:$8 sm:$0x3] }
   0x4   :  { %s1511_s17 = smov 83   ;;  %s1512_s20 = smov 68   ;;  %vm374_vm0 = vcmp.lt.s32.totalorder %v1642_v6, 96  ;;  %v379_v8 = vperm.slane %v1394_v7, 1  ;;  %vm182_vm1 = vcmp.lt.s32.totalorder %v1642_v6, 112  ;;  %v378_v32 = vperm.slane %v1394_v7, 0 }
   0x5   :  { %s1513_s21 = smov 2   ;;  %s1514_s22 = smov 125   ;;  %v1386_v16 = vld [vmem:[%s2822_s2 + $0x7] ss:$8 sm:$0x3]  ;;  %vm158_vm2 = vcmp.lt.s32.totalorder %v1642_v6, 113 }
   0x6   :  { %v1667_v17 = vperm.slane %v1386_v16, 1  ;;  %v1669_v18 = vperm.slane %v1386_v16, 0  ;;  %s1515_s25 = smov 1   ;;  %v1385_v42 = vld [vmem:[%s2822_s2 + $0x6] ss:$8 sm:$0x3] }
   0x7   :  { %v1717_v45 = vperm.slane %v1385_v42, 0  ;;  %v1719_v46 = vperm.slane %v1385_v42, 1  ;;  %v1393_v58 = vld [vmem:[%s2822_s2 + $0x16] ss:$8 sm:$0x3]  ;;  %vm350_vm3 = vcmp.lt.s32.totalorder %v1642_v6, 98 }
   0x8   :  { %2859 = vst [vmem:[#allocation2_spill] sm:$0xff] %v1667_v17  ;;  %v355_v61 = vperm.slane %v1393_v58, 1  ;;  %s1517_s9 = smov 30   ;;  %vm566_vm4 = vcmp.lt.s32.totalorder %v1642_v6, 80  ;;  %vm134_vm5 = vcmp.lt.s32.totalorder %v1642_v6, 127  ;;  %vm638_vm6 = vcmp.lt.s32.totalorder %v1642_v6, 64 }
   0x9   :  { %2860 = vst [vmem:[#allocation3_spill] sm:$0xff] %v1669_v18  ;;  %vm326_vm7 = vcmp.lt.s32.totalorder %v1642_v6, 126  ;;  %s1521_s26 = smov 32   ;;  %s1522_s30 = smov 45   ;;  %vm542_vm8 = vcmp.lt.s32.totalorder %v1642_v6, 83  ;;  %vm614_vm9 = vcmp.lt.s32.totalorder %v1642_v6, 68 }
   0xa   :  { %194 = vrot.lane.b32.xlu1 %v1592_v2, %s1503_s28  ;;  %2861 = vst [vmem:[#allocation4_spill] sm:$0xff] %v1717_v45  ;;  %s1523_s10 = smov 16   ;;  %vm302_vm10 = vcmp.lt.s32.totalorder %v1642_v6, 2  ;;  %s1524_s18 = smov 60   ;;  %vm518_vm11 = vcmp.lt.s32.totalorder %v1642_v6, 125  ;;  %vm110_vm12 = vcmp.lt.s32.totalorder %v1642_v6, 1 }
   0xb   :  { %180 = vrot.lane.b32.xlu0 %v1597_v3, %s1503_s28  ;;  %372 = vrot.lane.b32.xlu2 %v1597_v3, %s1504_s29  ;;  %2862 = vst [vmem:[#allocation5_spill] sm:$0xff] %v1719_v46  ;;  %vm710_vm13 = vcmp.lt.s32.totalorder %v1642_v6, 124  ;;  %vm278_vm14 = vcmp.lt.s32.totalorder %v1642_v6, 30  ;;  %vm494_vm15 = vcmp.lt.s32.totalorder %v1642_v6, 3  ;;  %s1530_s19 = smov 94  }
  0x12   :  { %386 = vrot.lane.b32.xlu1 %v1592_v2, %s1504_s29 }
  0x13   :  { %384 = vrot.lane.b32.xlu0 %v1577_v0, %s1504_s29  ;;  %154 = vrot.lane.b32.xlu2 %v1582_v1, %s1505_s11  ;;  %s1516_s29 = smov 124  }
  0x1a   :  { %168 = vrot.lane.b32.xlu1 %v1577_v0, %s1505_s11 }
  0x1b   :  { %156 = vrot.lane.b32.xlu0 %v1597_v3, %s1505_s11  ;;  %170 = vrot.lane.b32.xlu2 %v1592_v2, %s1505_s11 }
  0x22   :  { %348 = vrot.lane.b32.xlu1 %v1597_v3, %s1506_s12 }
  0x23   :  { %346 = vrot.lane.b32.xlu0 %v1582_v1, %s1506_s12  ;;  %360 = vrot.lane.b32.xlu2 %v1577_v0, %s1506_s12 }
  0x2a   :  { %562 = vrot.lane.b32.xlu1 %v1582_v1, %s1507_s13 }
  0x2b   :  { %362 = vrot.lane.b32.xlu0 %v1592_v2, %s1506_s12  ;;  %564 = vrot.lane.b32.xlu2 %v1597_v3, %s1507_s13 }
  0x32   :  { %578 = vrot.lane.b32.xlu1 %v1592_v2, %s1507_s13 }
  0x33   :  { %576 = vrot.lane.b32.xlu0 %v1577_v0, %s1507_s13  ;;  %130 = vrot.lane.b32.xlu2 %v1582_v1, %s1508_s14  ;;  %s1518_s13 = smov 3  }
  0x3a   :  { %144 = vrot.lane.b32.xlu1 %v1577_v0, %s1508_s14 }
  0x3b   :  { %132 = vrot.lane.b32.xlu0 %v1597_v3, %s1508_s14  ;;  %146 = vrot.lane.b32.xlu2 %v1592_v2, %s1508_s14 }
  0x42   :  { %636 = vrot.lane.b32.xlu1 %v1597_v3, %s1509_s15 }
  0x43   :  { %634 = vrot.lane.b32.xlu0 %v1582_v1, %s1509_s15  ;;  %648 = vrot.lane.b32.xlu2 %v1577_v0, %s1509_s15 }
  0x4a   :  { %322 = vrot.lane.b32.xlu1 %v1582_v1, %s1510_s16 }
  0x4b   :  { %650 = vrot.lane.b32.xlu0 %v1592_v2, %s1509_s15  ;;  %324 = vrot.lane.b32.xlu2 %v1597_v3, %s1510_s16  ;;  %s1529_s15 = smov 51  }
  0x52   :  { %338 = vrot.lane.b32.xlu1 %v1592_v2, %s1510_s16 }
  0x53   :  { %336 = vrot.lane.b32.xlu0 %v1577_v0, %s1510_s16  ;;  %538 = vrot.lane.b32.xlu2 %v1582_v1, %s1511_s17 }
  0x5a   :  { %552 = vrot.lane.b32.xlu1 %v1577_v0, %s1511_s17 }
  0x5b   :  { %540 = vrot.lane.b32.xlu0 %v1597_v3, %s1511_s17  ;;  %554 = vrot.lane.b32.xlu2 %v1592_v2, %s1511_s17  ;;  %s1519_s17 = smov 15  }
  0x5d   :  { %v371_v5 = vpop.permute.xlu2 %370 }
  0x62   :  { %612 = vrot.lane.b32.xlu1 %v1597_v3, %s1512_s20 }
  0x63   :  { %610 = vrot.lane.b32.xlu0 %v1582_v1, %s1512_s20  ;;  %624 = vrot.lane.b32.xlu2 %v1577_v0, %s1512_s20 }
  0x65   :  { %v373_v9 = vpop.permute.xlu2 %372 }
  0x66   :  { %v376_v10 = vsel %vm374_vm0, %v373_v9, %v371_v5  ;;  %v375_v33 = vsel %vm374_vm0, %v371_v5, %v373_v9  ;;  %v354_v9 = vperm.slane %v1393_v58, 0 }
  0x67   :  { %v1653_v11 = vmul.f32 %v379_v8, %v376_v10  ;;  %v382_v40 = vmul.f32 %v378_v32, %v375_v33 }
  0x6a   :  { %298 = vrot.lane.b32.xlu1 %v1582_v1, %s1513_s21 }
  0x6b   :  { %626 = vrot.lane.b32.xlu0 %v1592_v2, %s1512_s20  ;;  %300 = vrot.lane.b32.xlu2 %v1597_v3, %s1513_s21  ;;  %s1520_s20 = smov 4  }
  0x6d   :  { %v155_v12 = vpop.permute.xlu2 %154 }
  0x72   :  { %314 = vrot.lane.b32.xlu1 %v1592_v2, %s1513_s21 }
  0x73   :  { %312 = vrot.lane.b32.xlu0 %v1577_v0, %s1513_s21  ;;  %514 = vrot.lane.b32.xlu2 %v1582_v1, %s1514_s22  ;;  %s1525_s21 = smov 34  }
  0x74   :  { %v193_v13 = vpop.permute.xlu1 %192 }
  0x75   :  { %v179_v14 = vpop.permute.xlu0 %178  ;;  %v171_v15 = vpop.permute.xlu2 %170 }
  0x7a   :  { %528 = vrot.lane.b32.xlu1 %v1577_v0, %s1514_s22 }
  0x7b   :  { %516 = vrot.lane.b32.xlu0 %v1597_v3, %s1514_s22  ;;  %530 = vrot.lane.b32.xlu2 %v1592_v2, %s1514_s22  ;;  %s1526_s22 = smov 48  }
  0x7c   :  { %v195_v19 = vpop.permute.xlu1 %194 }
  0x7d   :  { %v181_v20 = vpop.permute.xlu0 %180  ;;  %v196_v21 = vsel %vm182_vm1, %v193_v13, %v195_v19  ;;  %v197_v22 = vsel %vm182_vm1, %v195_v19, %v193_v13  ;;  %v1680_v25 = vpop.permute.xlu2 %360 }
  0x7e   :  { %v183_v23 = vsel %vm182_vm1, %v179_v14, %v181_v20  ;;  %v184_v24 = vsel %vm182_vm1, %v181_v20, %v179_v14  ;;  %v1683_v26 = vmul.f32 %v197_v22, %v1667_v17  ;;  %v198_v29 = vmul.f32 %v196_v21, %v1669_v18 }
  0x7f   :  { %v1686_v27 = vmul.f32 %v1667_v17, %v184_v24  ;;  %v190_v28 = vmul.f32 %v1669_v18, %v183_v23 }
  0x81   :  { %v775_v30 = vpack.c.bf16 %v198_v29, %v190_v28 }
  0x82   :  { %108 = vrot.lane.b32.xlu1 %v1597_v3, %s1515_s25 }
  0x83   :  { %106 = vrot.lane.b32.xlu0 %v1582_v1, %s1515_s25  ;;  %857 = vmatpush.bf16.msra.mxu0 %v775_v30 }
  0x84   :  { %120 = vrot.lane.b32.xlu2 %v1577_v0, %s1515_s25  ;;  %v387_v34 = vpop.permute.xlu1 %386 }
  0x85   :  { %v385_v35 = vpop.permute.xlu0 %384  ;;  %v1704_v38 = vpop.permute.xlu2 %564 }
  0x86   :  { %v388_v36 = vsel %vm374_vm0, %v385_v35, %v387_v34  ;;  %v389_v37 = vsel %vm374_vm0, %v387_v34, %v385_v35  ;;  %vm86_vm0 = vcmp.lt.s32.totalorder %v1642_v6, 15 }
  0x87   :  { %v1706_v39 = vmul.f32 %v389_v37, %v379_v8  ;;  %v390_v41 = vmul.f32 %v388_v36, %v378_v32  ;;  %v1402_v8 = vld [vmem:[%s2822_s2 + $0x27] ss:$8 sm:$0x3] }
  0x88   :  { %v571_v10 = vperm.slane %v1402_v8, 1  ;;  %v570_v30 = vperm.slane %v1402_v8, 0 }
  0x89   :  { %v791_v43 = vpack.c.bf16 %v390_v41, %v382_v40 }
  0x8a   :  { %706 = vrot.lane.b32.xlu1 %v1582_v1, %s1516_s29 }
  0x8b   :  { %122 = vrot.lane.b32.xlu0 %v1592_v2, %s1515_s25  ;;  %870 = vmatpush.bf16.msra.mxu1 %v791_v43 }
  0x8c   :  { %708 = vrot.lane.b32.xlu2 %v1597_v3, %s1516_s29  ;;  %v169_v47 = vpop.permute.xlu1 %168 }
  0x8d   :  { %v157_v48 = vpop.permute.xlu0 %156  ;;  %v172_v49 = vsel %vm158_vm2, %v169_v47, %v171_v15  ;;  %v173_v50 = vsel %vm158_vm2, %v171_v15, %v169_v47  ;;  %v1730_v53 = vpop.permute.xlu2 %130 }
  0x8e   :  { %v159_v51 = vsel %vm158_vm2, %v155_v12, %v157_v48  ;;  %v160_v52 = vsel %vm158_vm2, %v157_v48, %v155_v12  ;;  %v174_v54 = vmul.f32 %v172_v49, %v1717_v45  ;;  %v1734_v55 = vmul.f32 %v173_v50, %v1719_v46 }
  0x8f   :  { %v166_v56 = vmul.f32 %v1717_v45, %v159_v51  ;;  %v1738_v57 = vmul.f32 %v1719_v46, %v160_v52  ;;  %v1382_v46 = vld [vmem:[%s2822_s2 + $0x2] ss:$8 sm:$0x3] }
  0x90   :  { %v2133_v18 = vperm.slane %v1382_v46, 0 }
  0x91   :  { %v773_v59 = vpack.c.bf16 %v174_v54, %v166_v56 }
  0x92   :  { %722 = vrot.lane.b32.xlu1 %v1592_v2, %s1516_s29  ;;  %2879 = vst [vmem:[#allocation22_spill] sm:$0xff] %v2133_v18 }
  0x93   :  { %720 = vrot.lane.b32.xlu0 %v1577_v0, %s1516_s29  ;;  %858 = vmatpush.bf16.msra.mxu0 %v773_v59  ;;  %s1527_s29 = smov 17  }
  0x94   :  { %274 = vrot.lane.b32.xlu2 %v1582_v1, %s1517_s9  ;;  %v349_v62 = vpop.permute.xlu1 %348 }
  0x95   :  { %v347_v63 = vpop.permute.xlu0 %346  ;;  %v147_v5 = vpop.permute.xlu2 %146 }
  0x96   :  { %v352_v4 = vsel %vm350_vm3, %v349_v62, %v347_v63  ;;  %v351_v12 = vsel %vm350_vm3, %v347_v63, %v349_v62 }
  0x97   :  { %v1751_v7 = vmul.f32 %v355_v61, %v352_v4  ;;  %v358_v21 = vmul.f32 %v354_v9, %v351_v12  ;;  %v1410_v4 = vld [vmem:[%s2822_s2 + $0x37] ss:$8 sm:$0x3] }
  0x98   :  { %v743_v8 = vperm.slane %v1410_v4, 1 }
  0x9a   :  { %288 = vrot.lane.b32.xlu1 %v1577_v0, %s1517_s9 }
  0x9b   :  { %276 = vrot.lane.b32.xlu0 %v1597_v3, %s1517_s9 }
  0x9c   :  { %290 = vrot.lane.b32.xlu2 %v1592_v2, %s1517_s9  ;;  %v563_v13 = vpop.permute.xlu1 %562  ;;  %s1528_s9 = smov 111  }
  0x9d   :  { %v363_v14 = vpop.permute.xlu0 %362  ;;  %v568_v15 = vsel %vm566_vm4, %v1704_v38, %v563_v13  ;;  %v1771_v20 = vpop.permute.xlu2 %648 }
  0x9e   :  { %v364_v16 = vsel %vm350_vm3, %v1680_v25, %v363_v14  ;;  %v365_v19 = vsel %vm350_vm3, %v363_v14, %v1680_v25  ;;  %v1773_v22 = vmul.f32 %v571_v10, %v568_v15  ;;  %v567_v25 = vsel %vm566_vm4, %v563_v13, %v1704_v38  ;;  %v1384_v38 = vld [vmem:[%s2822_s2 + $0x5] ss:$8 sm:$0x3]  ;;  %v1405_v14 = vld [vmem:[%s2822_s2 + $0x32] ss:$8 sm:$0x3] }
  0x9f   :  { %v366_v23 = vmul.f32 %v364_v16, %v354_v9  ;;  %v1775_v24 = vmul.f32 %v365_v19, %v355_v61  ;;  %v574_v40 = vmul.f32 %v570_v30, %v567_v25  ;;  %v1802_v47 = vperm.slane %v1384_v38, 0  ;;  %v1392_v16 = vld [vmem:[%s2822_s2 + $0x15] ss:$8 sm:$0x3] }
  0xa0   :  { %2863 = vst [vmem:[#allocation6_spill] sm:$0xff] %v1773_v22  ;;  %v1804_v48 = vperm.slane %v1384_v38, 1  ;;  %v642_v19 = vperm.slane %v1405_v14, 0  ;;  %vm686_vm3 = vcmp.lt.s32.totalorder %v1642_v6, 4 }
  0xa1   :  { %v789_v28 = vpack.c.bf16 %v366_v23, %v358_v21  ;;  %2865 = vst [vmem:[#allocation8_spill] sm:$0xff] %v1802_v47  ;;  %v643_v21 = vperm.slane %v1405_v14, 1  ;;  %v331_v23 = vperm.slane %v1392_v16, 1 }
  0xa2   :  { %492 = vrot.lane.b32.xlu1 %v1597_v3, %s1518_s13  ;;  %2866 = vst [vmem:[#allocation9_spill] sm:$0xff] %v1804_v48 }
  0xa3   :  { %490 = vrot.lane.b32.xlu0 %v1582_v1, %s1518_s13  ;;  %871 = vmatpush.bf16.msra.mxu1 %v789_v28 }
  0xa4   :  { %504 = vrot.lane.b32.xlu2 %v1577_v0, %s1518_s13  ;;  %v579_v32 = vpop.permute.xlu1 %578 }
  0xa5   :  { %v577_v33 = vpop.permute.xlu0 %576  ;;  %v1789_v36 = vpop.permute.xlu2 %324 }
  0xa6   :  { %v580_v34 = vsel %vm566_vm4, %v577_v33, %v579_v32  ;;  %v581_v35 = vsel %vm566_vm4, %v579_v32, %v577_v33  ;;  %vm254_vm4 = vcmp.lt.s32.totalorder %v1642_v6, 32 }
  0xa7   :  { %v1791_v37 = vmul.f32 %v581_v35, %v571_v10  ;;  %v582_v41 = vmul.f32 %v580_v34, %v570_v30  ;;  %v742_v30 = vperm.slane %v1410_v4, 0  ;;  %v330_v4 = vperm.slane %v1392_v16, 0 }
  0xa9   :  { %2864 = vst [vmem:[#allocation7_spill] sm:$0xff] %v1791_v37  ;;  %v807_v42 = vpack.c.bf16 %v582_v41, %v574_v40 }
  0xaa   :  { %82 = vrot.lane.b32.xlu1 %v1582_v1, %s1519_s17 }
  0xab   :  { %506 = vrot.lane.b32.xlu0 %v1592_v2, %s1518_s13  ;;  %883 = vmatpush.bf16.msra.mxu2 %v807_v42 }
  0xac   :  { %84 = vrot.lane.b32.xlu2 %v1597_v3, %s1519_s17  ;;  %v145_v49 = vpop.permute.xlu1 %144 }
  0xad   :  { %v133_v50 = vpop.permute.xlu0 %132  ;;  %v148_v51 = vsel %vm134_vm5, %v145_v49, %v147_v5  ;;  %v149_v52 = vsel %vm134_vm5, %v147_v5, %v145_v49  ;;  %v1818_v58 = vpop.permute.xlu2 %538 }
  0xae   :  { %v135_v54 = vsel %vm134_vm5, %v1730_v53, %v133_v50  ;;  %v136_v56 = vsel %vm134_vm5, %v133_v50, %v1730_v53  ;;  %v150_v59 = vmul.f32 %v148_v51, %v1802_v47  ;;  %v1822_v61 = vmul.f32 %v149_v52, %v1804_v48 }
  0xaf   :  { %v142_v62 = vmul.f32 %v1802_v47, %v135_v54  ;;  %v1826_v63 = vmul.f32 %v1804_v48, %v136_v56  ;;  %v769_v53 = vpack.c.bf16 %v1577_v0, %v1582_v1 }
  0xb1   :  { %v771_v5 = vpack.c.bf16 %v150_v59, %v142_v62 }
  0xb2   :  { %98 = vrot.lane.b32.xlu1 %v1592_v2, %s1519_s17 }
  0xb3   :  { %96 = vrot.lane.b32.xlu0 %v1577_v0, %s1519_s17  ;;  %859 = vmatpush.bf16.msra.mxu0 %v771_v5 }
  0xb4   :  { %682 = vrot.lane.b32.xlu2 %v1582_v1, %s1520_s20  ;;  %v637_v9 = vpop.permute.xlu1 %636 }
  0xb5   :  { %v635_v10 = vpop.permute.xlu0 %634  ;;  %v555_v13 = vpop.permute.xlu2 %554 }
  0xb6   :  { %v640_v12 = vsel %vm638_vm6, %v637_v9, %v635_v10  ;;  %v639_v28 = vsel %vm638_vm6, %v635_v10, %v637_v9 }
  0xb7   :  { %v1844_v15 = vmul.f32 %v743_v8, %v640_v12  ;;  %v1855_v33 = vmul.f32 %v642_v19, %v640_v12  ;;  %v1868_v38 = vmul.f32 %v643_v21, %v639_v28  ;;  %v746_v52 = vmul.f32 %v742_v30, %v639_v28  ;;  %860 = vmatpush.bf16.msra.mxu0 %v769_v53 }
  0xba   :  { %696 = vrot.lane.b32.xlu1 %v1577_v0, %s1520_s20 }
  0xbb   :  { %684 = vrot.lane.b32.xlu0 %v1597_v3, %s1520_s20 }
  0xbc   :  { %698 = vrot.lane.b32.xlu2 %v1592_v2, %s1520_s20  ;;  %v323_v25 = vpop.permute.xlu1 %322 }
  0xbd   :  { %v651_v32 = vpop.permute.xlu0 %650  ;;  %v328_v34 = vsel %vm326_vm7, %v1789_v36, %v323_v25  ;;  %v1866_v41 = vpop.permute.xlu2 %624  ;;  %v327_v5 = vsel %vm326_vm7, %v323_v25, %v1789_v36  ;;  %v1401_v36 = vld [vmem:[%s2822_s2 + $0x26] ss:$8 sm:$0x3] }
  0xbe   :  { %v652_v35 = vsel %vm638_vm6, %v1771_v20, %v651_v32  ;;  %v653_v40 = vsel %vm638_vm6, %v651_v32, %v1771_v20  ;;  %v1870_v42 = vmul.f32 %v331_v23, %v328_v34  ;;  %v334_v16 = vmul.f32 %v330_v4, %v327_v5 }
  0xbf   :  { %v1872_v49 = vmul.f32 %v653_v40, %v642_v19  ;;  %v1874_v50 = vmul.f32 %v652_v35, %v643_v21  ;;  %v1876_v51 = vmul.f32 %v743_v8, %v653_v40  ;;  %v748_v54 = vmul.f32 %v742_v30, %v652_v35 }
  0xc0   :  { %v546_v25 = vperm.slane %v1401_v36, 0  ;;  %v547_v32 = vperm.slane %v1401_v36, 1  ;;  %vm470_vm6 = vcmp.lt.s32.totalorder %v1642_v6, 45 }
  0xc1   :  { %v823_v62 = vpack.c.bf16 %v748_v54, %v746_v52 }
  0xc2   :  { %252 = vrot.lane.b32.xlu1 %v1597_v3, %s1521_s26 }
  0xc3   :  { %250 = vrot.lane.b32.xlu0 %v1582_v1, %s1521_s26  ;;  %896 = vmatpush.bf16.msra.mxu3 %v823_v62 }
  0xc4   :  { %264 = vrot.lane.b32.xlu2 %v1577_v0, %s1521_s26  ;;  %v339_v8 = vpop.permute.xlu1 %338 }
  0xc5   :  { %v337_v9 = vpop.permute.xlu0 %336  ;;  %v1894_v14 = vpop.permute.xlu2 %300 }
  0xc6   :  { %v340_v10 = vsel %vm326_vm7, %v337_v9, %v339_v8  ;;  %v341_v12 = vsel %vm326_vm7, %v339_v8, %v337_v9  ;;  %vm2858_vm7 = vcmp.lt.s32.totalorder %v1642_v6, 16 }
  0xc7   :  { %v342_v19 = vmul.f32 %v340_v10, %v330_v4  ;;  %v1896_v21 = vmul.f32 %v341_v12, %v331_v23  ;;  %v1409_v10 = vld [vmem:[%s2822_s2 + $0x36] ss:$8 sm:$0x3] }
  0xc9   :  { %v787_v28 = vpack.c.bf16 %v342_v19, %v334_v16 }
  0xca   :  { %466 = vrot.lane.b32.xlu1 %v1582_v1, %s1522_s30 }
  0xcb   :  { %266 = vrot.lane.b32.xlu0 %v1592_v2, %s1521_s26  ;;  %872 = vmatpush.bf16.msra.mxu1 %v787_v28 }
  0xcc   :  { %468 = vrot.lane.b32.xlu2 %v1597_v3, %s1522_s30  ;;  %v553_v23 = vpop.permute.xlu1 %552 }
  0xcd   :  { %v541_v34 = vpop.permute.xlu0 %540  ;;  %v556_v35 = vsel %vm542_vm8, %v553_v23, %v555_v13  ;;  %v557_v40 = vsel %vm542_vm8, %v555_v13, %v553_v23  ;;  %v1909_v62 = vpop.permute.xlu2 %514  ;;  %v1391_v23 = vld [vmem:[%s2822_s2 + $0x14] ss:$8 sm:$0x3] }
  0xce   :  { %v543_v52 = vsel %vm542_vm8, %v1818_v58, %v541_v34  ;;  %v544_v54 = vsel %vm542_vm8, %v541_v34, %v1818_v58  ;;  %v558_v4 = vmul.f32 %v556_v35, %v546_v25  ;;  %v1911_v5 = vmul.f32 %v557_v40, %v547_v32 }
  0xcf   :  { %v550_v8 = vmul.f32 %v546_v25, %v543_v52  ;;  %v1913_v9 = vmul.f32 %v547_v32, %v544_v54  ;;  %v732_v58 = vperm.slane %v1409_v10, 1  ;;  %v1404_v25 = vld [vmem:[%s2822_s2 + $0x31] ss:$8 sm:$0x3]  ;;  %v307_v40 = vperm.slane %v1391_v23, 1 }
  0xd0   :  { %2867 = vst [vmem:[#allocation10_spill] sm:$0xff] %v1911_v5  ;;  %v618_v34 = vperm.slane %v1404_v25, 0  ;;  %v619_v35 = vperm.slane %v1404_v25, 1  ;;  %v731_v52 = vperm.slane %v1409_v10, 0  ;;  %vm662_vm8 = vcmp.lt.s32.totalorder %v1642_v6, 60 }
  0xd1   :  { %2868 = vst [vmem:[#allocation11_spill] sm:$0xff] %v1913_v9  ;;  %v805_v12 = vpack.c.bf16 %v558_v4, %v550_v8 }
  0xd2   :  { %482 = vrot.lane.b32.xlu1 %v1592_v2, %s1522_s30 }
  0xd3   :  { %480 = vrot.lane.b32.xlu0 %v1577_v0, %s1522_s30  ;;  %884 = vmatpush.bf16.msra.mxu2 %v805_v12 }
  0xd4   :  { %58 = vrot.lane.b32.xlu2 %v1582_v1, %s1523_s10  ;;  %v613_v16 = vpop.permute.xlu1 %612 }
  0xd5   :  { %v611_v19 = vpop.permute.xlu0 %610  ;;  %v1927_v28 = vpop.permute.xlu2 %530 }
  0xd6   :  { %v616_v36 = vsel %vm614_vm9, %v613_v16, %v611_v19  ;;  %v615_v54 = vsel %vm614_vm9, %v611_v19, %v613_v16 }
  0xd7   :  { %v1932_v32 = vmul.f32 %v732_v58, %v616_v36  ;;  %v1946_v12 = vmul.f32 %v618_v34, %v616_v36  ;;  %v1959_v19 = vmul.f32 %v619_v35, %v615_v54  ;;  %v735_v29 = vmul.f32 %v731_v52, %v615_v54 }
  0xda   :  { %72 = vrot.lane.b32.xlu1 %v1577_v0, %s1523_s10 }
  0xdb   :  { %60 = vrot.lane.b32.xlu0 %v1597_v3, %s1523_s10 }
  0xdc   :  { %74 = vrot.lane.b32.xlu2 %v1592_v2, %s1523_s10  ;;  %v299_v4 = vpop.permute.xlu1 %298 }
  0xdd   :  { %v627_v8 = vpop.permute.xlu0 %626  ;;  %v303_v25 = vsel %vm302_vm10, %v299_v4, %v1894_v14 }
  0xde   :  { %v628_v13 = vsel %vm614_vm9, %v1866_v41, %v627_v8  ;;  %v629_v10 = vsel %vm614_vm9, %v627_v8, %v1866_v41  ;;  %v1957_v16 = vpop.permute.xlu2 %120  ;;  %v1961_v43 = vmul.f32 %v307_v40, %v303_v25  ;;  %v306_v25 = vperm.slane %v1391_v23, 0 }
  0xdf   :  { %v1963_v36 = vmul.f32 %v629_v10, %v618_v34  ;;  %v1965_v30 = vmul.f32 %v628_v13, %v619_v35  ;;  %v737_v44 = vmul.f32 %v731_v52, %v628_v13  ;;  %v1967_v20 = vmul.f32 %v732_v58, %v629_v10 }
  0xe0   :  { %2869 = vst [vmem:[#allocation12_spill] sm:$0xff] %v1961_v43  ;;  %v304_v13 = vsel %vm302_vm10, %v1894_v14, %v299_v4  ;;  %vm230_vm9 = vcmp.lt.s32.totalorder %v1642_v6, 34 }
  0xe1   :  { %v821_v60 = vpack.c.bf16 %v737_v44, %v735_v29  ;;  %v310_v52 = vmul.f32 %v306_v25, %v304_v13 }
  0xe2   :  { %660 = vrot.lane.b32.xlu1 %v1597_v3, %s1524_s18 }
  0xe3   :  { %658 = vrot.lane.b32.xlu0 %v1582_v1, %s1524_s18  ;;  %897 = vmatpush.bf16.msra.mxu3 %v821_v60  ;;  %v1400_v60 = vld [vmem:[%s2822_s2 + $0x25] ss:$8 sm:$0x3] }
  0xe4   :  { %672 = vrot.lane.b32.xlu2 %v1577_v0, %s1524_s18  ;;  %v315_v58 = vpop.permute.xlu1 %314  ;;  %v522_v4 = vperm.slane %v1400_v60, 0  ;;  %v523_v13 = vperm.slane %v1400_v60, 1 }
  0xe5   :  { %v313_v35 = vpop.permute.xlu0 %312 }
  0xe6   :  { %v316_v44 = vsel %vm302_vm10, %v313_v35, %v315_v58  ;;  %v317_v29 = vsel %vm302_vm10, %v315_v58, %v313_v35  ;;  %v1987_v23 = vpop.permute.xlu2 %708  ;;  %vm446_vm10 = vcmp.lt.s32.totalorder %v1642_v6, 48 }
  0xe7   :  { %v318_v54 = vmul.f32 %v317_v29, %v306_v25  ;;  %v1989_v10 = vmul.f32 %v316_v44, %v307_v40 }
  0xe9   :  { %2870 = vst [vmem:[#allocation13_spill] sm:$0xff] %v1989_v10  ;;  %v785_v14 = vpack.c.bf16 %v318_v54, %v310_v52 }
  0xea   :  { %226 = vrot.lane.b32.xlu1 %v1582_v1, %s1525_s21 }
  0xeb   :  { %674 = vrot.lane.b32.xlu0 %v1592_v2, %s1524_s18  ;;  %873 = vmatpush.bf16.msra.mxu1 %v785_v14 }
  0xec   :  { %228 = vrot.lane.b32.xlu2 %v1597_v3, %s1525_s21  ;;  %v529_v40 = vpop.permute.xlu1 %528 }
  0xed   :  { %v517_v25 = vpop.permute.xlu0 %516  ;;  %v532_v58 = vsel %vm518_vm11, %v529_v40, %v1927_v28  ;;  %v533_v35 = vsel %vm518_vm11, %v1927_v28, %v529_v40  ;;  %v1408_v40 = vld [vmem:[%s2822_s2 + $0x35] ss:$8 sm:$0x3] }
  0xee   :  { %v519_v44 = vsel %vm518_vm11, %v1909_v62, %v517_v25  ;;  %v520_v29 = vsel %vm518_vm11, %v517_v25, %v1909_v62  ;;  %v2004_v52 = vpop.permute.xlu2 %274  ;;  %v534_v54 = vmul.f32 %v532_v58, %v522_v4  ;;  %v2006_v53 = vmul.f32 %v533_v35, %v523_v13 }
  0xef   :  { %v526_v8 = vmul.f32 %v522_v4, %v519_v44  ;;  %v2008_v60 = vmul.f32 %v523_v13, %v520_v29  ;;  %v715_v44 = vperm.slane %v1408_v40, 1  ;;  %v714_v47 = vperm.slane %v1408_v40, 0 }
  0xf0   :  { %2871 = vst [vmem:[#allocation14_spill] sm:$0xff] %v2006_v53  ;;  %vm38_vm11 = vcmp.lt.s32.totalorder %v1642_v6, 17 }
  0xf1   :  { %2872 = vst [vmem:[#allocation15_spill] sm:$0xff] %v2008_v60  ;;  %v803_v14 = vpack.c.bf16 %v534_v54, %v526_v8  ;;  %v1383_v8 = vld [vmem:[%s2822_s2 + $0x3] ss:$8 sm:$0x3]  ;;  %v2135_v60 = vperm.slane %v1382_v46, 1 }
  0xf2   :  { %242 = vrot.lane.b32.xlu1 %v1592_v2, %s1525_s21  ;;  %v2024_v25 = vperm.slane %v1383_v8, 0  ;;  %v2026_v58 = vperm.slane %v1383_v8, 1 }
  0xf3   :  { %240 = vrot.lane.b32.xlu0 %v1577_v0, %s1525_s21  ;;  %885 = vmatpush.bf16.msra.mxu2 %v803_v14  ;;  %2880 = vst [vmem:[#allocation23_spill] sm:$0xff] %v2135_v60 }
  0xf4   :  { %442 = vrot.lane.b32.xlu2 %v1582_v1, %s1526_s22  ;;  %v109_v62 = vpop.permute.xlu1 %108  ;;  %2873 = vst [vmem:[#allocation16_spill] sm:$0xff] %v2024_v25 }
  0xf5   :  { %v107_v28 = vpop.permute.xlu0 %106  ;;  %2874 = vst [vmem:[#allocation17_spill] sm:$0xff] %v2026_v58 }
  0xf6   :  { %v111_v4 = vsel %vm110_vm12, %v107_v28, %v109_v62  ;;  %v291_v13 = vpop.permute.xlu2 %290  ;;  %v112_v35 = vsel %vm110_vm12, %v109_v62, %v107_v28 }
  0xf7   :  { %v118_v14 = vmul.f32 %v2024_v25, %v112_v35  ;;  %v2047_v34 = vmul.f32 %v2026_v58, %v111_v4 }
  0xfa   :  { %456 = vrot.lane.b32.xlu1 %v1577_v0, %s1526_s22 }
  0xfb   :  { %444 = vrot.lane.b32.xlu0 %v1597_v3, %s1526_s22 }
  0xfc   :  { %458 = vrot.lane.b32.xlu2 %v1592_v2, %s1526_s22  ;;  %v707_v29 = vpop.permute.xlu1 %706  ;;  %s1531_s22 = smov 77  }
  0xfd   :  { %v123_v54 = vpop.permute.xlu0 %122  ;;  %v712_v8 = vsel %vm710_vm13, %v1987_v23, %v707_v29 }
  0xfe   :  { %v124_v62 = vsel %vm110_vm12, %v1957_v16, %v123_v54  ;;  %v125_v28 = vsel %vm110_vm12, %v123_v54, %v1957_v16  ;;  %v2044_v31 = vpop.permute.xlu2 %504  ;;  %v2049_v59 = vmul.f32 %v715_v44, %v712_v8  ;;  %v711_v16 = vsel %vm710_vm13, %v707_v29, %v1987_v23 }
  0xff   :  { %v126_v35 = vmul.f32 %v125_v28, %v2024_v25  ;;  %v2053_v41 = vmul.f32 %v124_v62, %v2026_v58  ;;  %v718_v62 = vmul.f32 %v714_v47, %v711_v16 }
 0x101   :  { %v767_v56 = vpack.c.bf16 %v126_v35, %v118_v14 }
 0x102   :  { %34 = vrot.lane.b32.xlu1 %v1597_v3, %s1527_s29 }
 0x103   :  { %32 = vrot.lane.b32.xlu0 %v1582_v1, %s1527_s29  ;;  %861 = vmatpush.bf16.msra.mxu0 %v767_v56  ;;  %v1390_v56 = vld [vmem:[%s2822_s2 + $0x13] ss:$8 sm:$0x3] }
 0x104   :  { %48 = vrot.lane.b32.xlu2 %v1577_v0, %s1527_s29  ;;  %v723_v4 = vpop.permute.xlu1 %722 }
 0x105   :  { %v721_v54 = vpop.permute.xlu0 %720 }
 0x106   :  { %v724_v40 = vsel %vm710_vm13, %v721_v54, %v723_v4  ;;  %v725_v14 = vsel %vm710_vm13, %v723_v4, %v721_v54  ;;  %v2070_v8 = vpop.permute.xlu2 %84  ;;  %vm206_vm13 = vcmp.lt.s32.totalorder %v1642_v6, 111 }
 0x107   :  { %v726_v28 = vmul.f32 %v724_v40, %v714_v47  ;;  %v2072_v35 = vmul.f32 %v725_v14, %v715_v44  ;;  %v282_v47 = vperm.slane %v1390_v56, 0  ;;  %v283_v44 = vperm.slane %v1390_v56, 1  ;;  %v1399_v56 = vld [vmem:[%s2822_s2 + $0x24] ss:$8 sm:$0x3] }
 0x109   :  { %v819_v23 = vpack.c.bf16 %v726_v28, %v718_v62 }
 0x10a   :  { %202 = vrot.lane.b32.xlu1 %v1582_v1, %s1528_s9 }
 0x10b   :  { %50 = vrot.lane.b32.xlu0 %v1592_v2, %s1527_s29  ;;  %898 = vmatpush.bf16.msra.mxu3 %v819_v23 }
 0x10c   :  { %204 = vrot.lane.b32.xlu2 %v1597_v3, %s1528_s9  ;;  %v289_v16 = vpop.permute.xlu1 %288 }
 0x10d   :  { %v277_v4 = vpop.permute.xlu0 %276  ;;  %v292_v54 = vsel %vm278_vm14, %v289_v16, %v291_v13  ;;  %v293_v40 = vsel %vm278_vm14, %v291_v13, %v289_v16 }
 0x10e   :  { %v279_v14 = vsel %vm278_vm14, %v2004_v52, %v277_v4  ;;  %v280_v62 = vsel %vm278_vm14, %v277_v4, %v2004_v52  ;;  %v2088_v28 = vpop.permute.xlu2 %682  ;;  %v294_v48 = vmul.f32 %v293_v40, %v282_v47  ;;  %v2090_v29 = vmul.f32 %v292_v54, %v283_v44 }
 0x10f   :  { %v286_v58 = vmul.f32 %v282_v47, %v280_v62  ;;  %v2092_v25 = vmul.f32 %v283_v44, %v279_v14  ;;  %v499_v52 = vperm.slane %v1399_v56, 1  ;;  %v498_v4 = vperm.slane %v1399_v56, 0 }
 0x110   :  { %2875 = vst [vmem:[#allocation18_spill] sm:$0xff] %v2090_v29  ;;  %vm422_vm14 = vcmp.lt.s32.totalorder %v1642_v6, 51 }
 0x111   :  { %2876 = vst [vmem:[#allocation19_spill] sm:$0xff] %v2092_v25  ;;  %v783_v23 = vpack.c.bf16 %v294_v48, %v286_v58 }
 0x112   :  { %218 = vrot.lane.b32.xlu1 %v1592_v2, %s1528_s9 }
 0x113   :  { %216 = vrot.lane.b32.xlu0 %v1577_v0, %s1528_s9  ;;  %874 = vmatpush.bf16.msra.mxu1 %v783_v23 }
 0x114   :  { %418 = vrot.lane.b32.xlu2 %v1582_v1, %s1529_s15  ;;  %v493_v47 = vpop.permute.xlu1 %492 }
 0x115   :  { %v491_v44 = vpop.permute.xlu0 %490 }
 0x116   :  { %v495_v48 = vsel %vm494_vm15, %v491_v44, %v493_v47  ;;  %v699_v58 = vpop.permute.xlu2 %698  ;;  %v496_v54 = vsel %vm494_vm15, %v493_v47, %v491_v44 }
 0x117   :  { %v2107_v16 = vmul.f32 %v499_v52, %v495_v48  ;;  %v502_v13 = vmul.f32 %v498_v4, %v496_v54 }
 0x119   :  { %2877 = vst [vmem:[#allocation20_spill] sm:$0xff] %v2107_v16 }
 0x11a   :  { %432 = vrot.lane.b32.xlu1 %v1577_v0, %s1529_s15 }
 0x11b   :  { %420 = vrot.lane.b32.xlu0 %v1597_v3, %s1529_s15 }
 0x11c   :  { %434 = vrot.lane.b32.xlu2 %v1592_v2, %s1529_s15  ;;  %v83_v40 = vpop.permute.xlu1 %82 }
 0x11d   :  { %v507_v14 = vpop.permute.xlu0 %506  ;;  %v87_v62 = vsel %vm86_vm0, %v83_v40, %v2070_v8 }
 0x11e   :  { %v508_v56 = vsel %vm494_vm15, %v2044_v31, %v507_v14  ;;  %v509_v23 = vsel %vm494_vm15, %v507_v14, %v2044_v31  ;;  %v2124_v48 = vpop.permute.xlu2 %264  ;;  %v88_v31 = vsel %vm86_vm0, %v2070_v8, %v83_v40  ;;  %vm853_vm15 = vcmask 130048  }
 0x11f   :  { %v510_v47 = vmul.f32 %v509_v23, %v498_v4  ;;  %v2126_v44 = vmul.f32 %v508_v56, %v499_v52  ;;  %v94_v14 = vmul.f32 %v2133_v18, %v88_v31  ;;  %v2149_v56 = vmul.f32 %v2135_v60, %v87_v62 }
 0x121   :  { %2878 = vst [vmem:[#allocation21_spill] sm:$0xff] %v2126_v44  ;;  %v801_v45 = vpack.c.bf16 %v510_v47, %v502_v13 }
 0x122   :  { %396 = vrot.lane.b32.xlu1 %v1597_v3, %s1530_s19 }
 0x123   :  { %394 = vrot.lane.b32.xlu0 %v1582_v1, %s1530_s19  ;;  %886 = vmatpush.bf16.msra.mxu2 %v801_v45 }
 0x124   :  { %408 = vrot.lane.b32.xlu2 %v1577_v0, %s1530_s19  ;;  %v99_v13 = vpop.permute.xlu1 %98  ;;  %v1407_v0 = vld [vmem:[%s2822_s2 + $0x34] ss:$8 sm:$0x3] }
 0x125   :  { %v97_v52 = vpop.permute.xlu0 %96  ;;  %v690_v62 = vperm.slane %v1407_v0, 0  ;;  %v691_v47 = vperm.slane %v1407_v0, 1  ;;  %v1389_v0 = vld [vmem:[%s2822_s2 + $0x12] ss:$8 sm:$0x3] }
 0x126   :  { %v100_v4 = vsel %vm86_vm0, %v97_v52, %v99_v13  ;;  %v101_v46 = vsel %vm86_vm0, %v99_v13, %v97_v52  ;;  %v469_v54 = vpop.permute.xlu2 %468 }
 0x127   :  { %v102_v23 = vmul.f32 %v101_v46, %v2133_v18  ;;  %v2153_v45 = vmul.f32 %v100_v4, %v2135_v60 }
 0x129   :  { %v765_v8 = vpack.c.bf16 %v102_v23, %v94_v14 }
 0x12a   :  { %586 = vrot.lane.b32.xlu1 %v1582_v1, %s1531_s22 }
 0x12b   :  { %410 = vrot.lane.b32.xlu0 %v1592_v2, %s1530_s19  ;;  %862 = vmatpush.bf16.msra.mxu0 %v765_v8 }
 0x12c   :  { %588 = vrot.lane.b32.xlu2 %v1597_v3, %s1531_s22  ;;  %v697_v31 = vpop.permute.xlu1 %696 }
 0x12d   :  { %v685_v13 = vpop.permute.xlu0 %684  ;;  %v700_v52 = vsel %vm686_vm3, %v697_v31, %v699_v58  ;;  %v701_v4 = vsel %vm686_vm3, %v699_v58, %v697_v31  ;;  %v259_v58 = vperm.slane %v1389_v0, 1 }
 0x12e   :  { %v687_v46 = vsel %vm686_vm3, %v2088_v28, %v685_v13  ;;  %v688_v14 = vsel %vm686_vm3, %v685_v13, %v2088_v28  ;;  %v702_v23 = vmul.f32 %v701_v4, %v690_v62  ;;  %v2166_v17 = vmul.f32 %v700_v52, %v691_v47  ;;  %v59_v8 = vpop.permute.xlu2 %58  ;;  %v2179_v28 = vld [vmem:[%s2820_s1] sm:$0xff] }
 0x12f   :  { %v694_v1 = vmul.f32 %v690_v62, %v688_v14  ;;  %v2168_v40 = vmul.f32 %v691_v47, %v687_v46  ;;  %v258_v4 = vperm.slane %v1389_v0, 0  ;;  %vm398_vm3 = vcmp.lt.s32.totalorder %v1642_v6, 94 }
 0x131   :  { %v817_v3 = vpack.c.bf16 %v702_v23, %v694_v1 }
 0x132   :  { %602 = vrot.lane.b32.xlu1 %v1592_v2, %s1531_s22  ;;  %v1398_v2 = vld [vmem:[%s2822_s2 + $0x23] ss:$8 sm:$0x3] }
 0x133   :  { %600 = vrot.lane.b32.xlu0 %v2179_v28, %s1531_s22  ;;  %899 = vmatpush.bf16.msra.mxu3 %v817_v3  ;;  %v475_v46 = vperm.slane %v1398_v2, 1  ;;  %v474_v53 = vperm.slane %v1398_v2, 0  ;;  %v1381_v2 = vld [vmem:[%s2822_s2 + $0x1] ss:$8 sm:$0x3] }
 0x134   :  { %v253_v62 = vpop.permute.xlu1 %252 }
 0x135   :  { %v251_v47 = vpop.permute.xlu0 %250 }
 0x136   :  { %v255_v31 = vsel %vm254_vm4, %v251_v47, %v253_v62  ;;  %v75_v52 = vpop.permute.xlu2 %74  ;;  %v256_v14 = vsel %vm254_vm4, %v253_v62, %v251_v47 }
 0x137   :  { %v2185_v13 = vmul.f32 %v259_v58, %v255_v31  ;;  %v262_v0 = vmul.f32 %v258_v4, %v256_v14 }
 0x139   :  { %2881 = vst [vmem:[#allocation24_spill] sm:$0xff] %v2185_v13 }
 0x13c   :  { %v467_v23 = vpop.permute.xlu1 %466 }
 0x13d   :  { %v267_v1 = vpop.permute.xlu0 %266  ;;  %v471_v3 = vsel %vm470_vm6, %v467_v23, %v469_v54  ;;  %v472_v25 = vsel %vm470_vm6, %v469_v54, %v467_v23  ;;  %v2223_v23 = vperm.slane %v1381_v2, 0 }
 0x13e   :  { %v268_v31 = vsel %vm254_vm4, %v2124_v48, %v267_v1  ;;  %v269_v60 = vsel %vm254_vm4, %v267_v1, %v2124_v48  ;;  %v2201_v18 = vmul.f32 %v475_v46, %v471_v3  ;;  %v2209_v29 = vpop.permute.xlu2 %672  ;;  %v2225_v1 = vperm.slane %v1381_v2, 1 }
 0x13f   :  { %v270_v16 = vmul.f32 %v269_v60, %v258_v4  ;;  %v2203_v44 = vmul.f32 %v268_v31, %v259_v58  ;;  %v478_v58 = vmul.f32 %v474_v53, %v472_v25  ;;  %2885 = vst [vmem:[#allocation28_spill] sm:$0xff] %v2223_v23  ;;  %vm590_vm4 = vcmp.lt.s32.totalorder %v1642_v6, 77 }
 0x140   :  { %2882 = vst [vmem:[#allocation25_spill] sm:$0xff] %v2201_v18 }
 0x141   :  { %2883 = vst [vmem:[#allocation26_spill] sm:$0xff] %v2203_v44  ;;  %v781_v62 = vpack.c.bf16 %v270_v16, %v262_v0 }
 0x142   :  { %2886 = vst [vmem:[#allocation29_spill] sm:$0xff] %v2225_v1 }
 0x143   :  { %875 = vmatpush.bf16.msra.mxu1 %v781_v62 }
 0x144   :  { %v483_v9 = vpop.permute.xlu1 %482 }
 0x145   :  { %v481_v5 = vpop.permute.xlu0 %480 }
 0x146   :  { %v484_v48 = vsel %vm470_vm6, %v481_v5, %v483_v9  ;;  %v485_v60 = vsel %vm470_vm6, %v483_v9, %v481_v5  ;;  %v229_v31 = vpop.permute.xlu2 %228 }
 0x147   :  { %v486_v16 = vmul.f32 %v485_v60, %v474_v53  ;;  %v2215_v4 = vmul.f32 %v484_v48, %v475_v46 }
 0x149   :  { %2884 = vst [vmem:[#allocation27_spill] sm:$0xff] %v2215_v4  ;;  %v799_v14 = vpack.c.bf16 %v486_v16, %v478_v58 }
 0x14b   :  { %887 = vmatpush.bf16.msra.mxu2 %v799_v14  ;;  %v1388_v14 = vld [vmem:[%s2822_s2 + $0x11] ss:$8 sm:$0x3] }
 0x14c   :  { %v73_v5 = vpop.permute.xlu1 %72  ;;  %v234_v43 = vperm.slane %v1388_v14, 0 }
 0x14d   :  { %v61_v9 = vpop.permute.xlu0 %60  ;;  %v76_v53 = vsel %vm2858_vm7, %v73_v5, %v75_v52  ;;  %v77_v25 = vsel %vm2858_vm7, %v75_v52, %v73_v5 }
 0x14e   :  { %v63_v46 = vsel %vm2858_vm7, %v59_v8, %v61_v9  ;;  %v64_v3 = vsel %vm2858_vm7, %v61_v9, %v59_v8  ;;  %v78_v0 = vmul.f32 %v77_v25, %v2223_v23  ;;  %v2237_v62 = vmul.f32 %v76_v53, %v2225_v1  ;;  %v2252_v8 = vld [vmem:[%s2822_s2 + $0x33] ss:$8 sm:$0x3]  ;;  %v443_v5 = vpop.permute.xlu2 %442  ;;  %v2261_v9 = vld [vmem:[%s2822_s2 + $0x40] ss:$8 sm:$0x3] }
 0x14f   :  { %v70_v48 = vmul.f32 %v2223_v23, %v64_v3  ;;  %v2241_v60 = vmul.f32 %v2225_v1, %v63_v46  ;;  %v666_v53 = vperm.slane %v2252_v8, 0  ;;  %v235_v25 = vperm.slane %v1388_v14, 1 }
 0x150   :  { %v754_v46 = vperm.slane %v2261_v9, 1 }
 0x151   :  { %v763_v58 = vpack.c.bf16 %v78_v0, %v70_v48 }
 0x153   :  { %863 = vmatpush.bf16.msra.mxu0 %v763_v58 }
 0x154   :  { %v2245_v16 = vpop.permute.xlu1 %660 }
 0x155   :  { %v2247_v2 = vpop.permute.xlu0 %658 }
 0x156   :  { %v664_v3 = vsel %vm662_vm8, %v2245_v16, %v2247_v2  ;;  %v459_v44 = vpop.permute.xlu2 %458 }
 0x157   :  { %v670_v47 = vmul.f32 %v666_v53, %v664_v3  ;;  %v2277_v23 = vmul.f32 %v754_v46, %v664_v3 }
 0x15c   :  { %v227_v0 = vpop.permute.xlu1 %226 }
 0x15d   :  { %v675_v48 = vpop.permute.xlu0 %674  ;;  %v231_v58 = vsel %vm230_vm9, %v227_v0, %v229_v31  ;;  %v232_v10 = vsel %vm230_vm9, %v229_v31, %v227_v0 }
 0x15e   :  { %v677_v54 = vsel %vm662_vm8, %v675_v48, %v2209_v29  ;;  %v2275_v52 = vmul.f32 %v235_v25, %v231_v58 }
 0x15f   :  { %v678_v1 = vmul.f32 %v677_v54, %v666_v53  ;;  %v2279_v18 = vmul.f32 %v754_v46, %v677_v54  ;;  %v238_v54 = vmul.f32 %v234_v43, %v232_v10  ;;  %v2303_v10 = vpop.permute.xlu2 %48 }
 0x161   :  { %v815_v4 = vpack.c.bf16 %v678_v1, %v670_v47  ;;  %v2887_v1 = vpack.c.bf16 %v1872_v49, %v1855_v33 }
 0x163   :  { %900 = vmatpush.bf16.msra.mxu3 %v815_v4  ;;  %v1397_v4 = vld [vmem:[%s2822_s2 + $0x22] ss:$8 sm:$0x3] }
 0x164   :  { %v243_v22 = vpop.permute.xlu1 %242 }
 0x165   :  { %v241_v37 = vpop.permute.xlu0 %240 }
 0x166   :  { %v244_v58 = vsel %vm230_vm9, %v241_v37, %v243_v22  ;;  %v245_v53 = vsel %vm230_vm9, %v243_v22, %v241_v37  ;;  %v2888_v22 = vpack.c.bf16 %v1963_v36, %v1946_v12  ;;  %v450_v37 = vperm.slane %v1397_v4, 0 }
 0x167   :  { %v246_v46 = vmul.f32 %v245_v53, %v234_v43  ;;  %v2289_v47 = vmul.f32 %v244_v58, %v235_v25  ;;  %901 = vmatpush.bf16.msra.mxu3 %v2887_v1  ;;  %v451_v43 = vperm.slane %v1397_v4, 1 }
 0x169   :  { %v779_v31 = vpack.c.bf16 %v246_v46, %v238_v54 }
 0x16b   :  { %876 = vmatpush.bf16.msra.mxu1 %v779_v31  ;;  %902 = vmatpush.bf16.msra.mxu3 %v2888_v22  ;;  %v2315_v22 = vpop.permute.xlu2 %204 }
 0x16c   :  { %v457_v33 = vpop.permute.xlu1 %456 }
 0x16d   :  { %v445_v49 = vpop.permute.xlu0 %444  ;;  %v460_v25 = vsel %vm446_vm10, %v457_v33, %v459_v44  ;;  %v461_v3 = vsel %vm446_vm10, %v459_v44, %v457_v33  ;;  %v2320_v44 = vld [vmem:[%s2822_s2] ss:$8 sm:$0x3]  ;;  %v753_v33 = vperm.slane %v2261_v9, 0 }
 0x16e   :  { %v447_v0 = vsel %vm446_vm10, %v443_v5, %v445_v49  ;;  %v448_v58 = vsel %vm446_vm10, %v445_v49, %v443_v5  ;;  %v462_v53 = vmul.f32 %v461_v3, %v450_v37  ;;  %v2305_v54 = vmul.f32 %v460_v25, %v451_v43 }
 0x16f   :  { %v454_v46 = vmul.f32 %v450_v37, %v448_v58  ;;  %v2307_v1 = vmul.f32 %v451_v43, %v447_v0  ;;  %v676_v5 = vsel %vm662_vm8, %v2209_v29, %v675_v48  ;;  %v2327_v37 = vperm.slane %v2320_v44, 0  ;;  %v827_v43 = vld [vmem:[%s2823_s3] sm:$0xff] }
 0x170   :  { %v663_v25 = vsel %vm662_vm8, %v2247_v2, %v2245_v16  ;;  %v759_v3 = vmul.f32 %v753_v33, %v676_v5  ;;  %v839_v0 = vunpack.c.l.b16 %v827_v43  ;;  %v2354_v16 = vld [vmem:[%s2822_s2 + $0x10] ss:$8 sm:$0x3] }
 0x171   :  { %v797_v12 = vpack.c.bf16 %v462_v53, %v454_v46  ;;  %2889 = vst [vmem:[#allocation30_spill] sm:$0xff] %v2327_v37  ;;  %v757_v46 = vmul.f32 %v753_v33, %v663_v25  ;;  %v2362_v13 = vperm.slane %v2354_v16, 0 }
 0x172   :  { %v2359_v14 = vpack.c.b16 %v839_v0, %v839_v0  ;;  %v840_v0 = vunpack.c.h.b16 %v827_v43  ;;  %v2892_v43 = vpack.c.bf16 %v1967_v20, %v1932_v32 }
 0x173   :  { %888 = vmatpush.bf16.msra.mxu2 %v797_v12  ;;  %v2357_v12 = vpop.permute.xlu2 %418  ;;  %v825_v36 = vpack.c.bf16 %v759_v3, %v757_v46  ;;  %2890 = vst [vmem:[#allocation31_spill] sm:$0xff] %v2362_v13  ;;  %v2891_v46 = vpack.c.bf16 %v1876_v51, %v1844_v15  ;;  %v2893_v15 = vpack.c.bf16 %v1683_v26, %v1686_v27 }
 0x174   :  { %v2311_v4 = vpop.permute.xlu1 %34 }
 0x175   :  { %v2313_v31 = vpop.permute.xlu0 %32 }
 0x176   :  { %v40_v49 = vsel %vm38_vm11, %v2311_v4, %v2313_v31 }
 0x177   :  { %v46_v58 = vmul.f32 %v2327_v37, %v40_v49 }
 0x17c   :  { %v2341_v29 = vpop.permute.xlu1 %202 }
 0x17d   :  { %v2343_v48 = vpop.permute.xlu0 %50  ;;  %v207_v33 = vsel %vm206_vm13, %v2341_v29, %v2315_v22 }
 0x17e   :  { %v53_v9 = vsel %vm38_vm11, %v2343_v48, %v2303_v10 }
 0x17f   :  { %v54_v53 = vmul.f32 %v53_v9, %v2327_v37  ;;  %v2387_v37 = vpack.c.b16 %v840_v0, %v840_v0  ;;  %v667_v0 = vperm.slane %v2252_v8, 1  ;;  %v2896_v8 = vpack.c.bf16 %v2166_v17, %v2168_v40 }
 0x181   :  { %v761_v2 = vpack.c.bf16 %v54_v53, %v46_v58  ;;  %v214_v58 = vmul.f32 %v2362_v13, %v207_v33 }
 0x183   :  { %864 = vmatpush.bf16.msra.mxu0 %v761_v2 }
 0x184   :  { %v2368_v49 = vpop.permute.xlu1 %218 }
 0x185   :  { %v2370_v9 = vpop.permute.xlu0 %216 }
 0x186   :  { %v220_v3 = vsel %vm206_vm13, %v2370_v9, %v2368_v49  ;;  %865 = vmatmul.bf16.vlgmr.msra.gmra.mxu0 %v2359_v14 }
 0x187   :  { %916 = vmatpush.bf16.msrb.mxu0 %v825_v36  ;;  %v222_v53 = vmul.f32 %v220_v3, %v2362_v13  ;;  %v2385_v36 = vld [vmem:[%s2822_s2 + $0x21] ss:$8 sm:$0x3]  ;;  %v2394_v3 = vpop.permute.xlu2 %434  ;;  %v671_v13 = vmul.f32 %v667_v0, %v663_v25 }
 0x188   :  { %v426_v33 = vperm.slane %v2385_v36, 0 }
 0x189   :  { %v777_v2 = vpack.c.bf16 %v222_v53, %v214_v58  ;;  %v2894_v53 = vpack.c.bf16 %v2072_v35, %v2049_v59  ;;  %v2897_v59 = vpack.c.bf16 %v1822_v61, %v1826_v63  ;;  %v2449_v63 = vld [vmem:[%s2822_s2 + $0x20] ss:$8 sm:$0x3] }
 0x18b   :  { %961 = vmatpush.bf16.msra.mxu0 %v2891_v46  ;;  %877 = vmatpush.bf16.msra.mxu1 %v777_v2  ;;  %v2895_v46 = vpack.c.bf16 %v1734_v55, %v1738_v57  ;;  %v679_v2 = vmul.f32 %v676_v5, %v667_v0  ;;  %v2431_v55 = vld [vmem:[%s2820_s1 + $0x8] sm:$0xff] }
 0x18c   :  { %v2399_v51 = vpop.permute.xlu1 %432  ;;  %v2436_v57 = vld [vmem:[%s2821_s0 + $0x8] sm:$0xff] }
 0x18d   :  { %v2401_v58 = vpop.permute.xlu0 %420  ;;  %v437_v20 = vsel %vm422_vm14, %v2394_v3, %v2399_v51  ;;  %v770_v35 = vpack.c.bf16 %v2431_v55, %v2436_v57  ;;  %v816_v5 = vpack.c.bf16 %v679_v2, %v671_v13  ;;  %v2898_v13 = vpack.c.bf16 %v1874_v50, %v1868_v38 }
 0x18e   :  { %v424_v32 = vsel %vm422_vm14, %v2401_v58, %v2357_v12  ;;  %878 = vmatmul.bf16.vlgmr.msra.gmra.mxu1 %v2387_v37  ;;  %v438_v26 = vmul.f32 %v437_v20, %v426_v33  ;;  %v402_v20 = vperm.slane %v2449_v63, 0 }
 0x18f   :  { %962 = vmatpush.bf16.msra.mxu0 %v2892_v43  ;;  %922 = vmatpush.bf16.msrb.mxu1 %v2893_v15  ;;  %v430_v27 = vmul.f32 %v426_v33, %v424_v32  ;;  %v829_v43 = vld [vmem:[%s2823_s3 + $0x10] sm:$0xf]  ;;  %v2444_v61 = vpop.permute.xlu2 %408  ;;  %v828_v32 = vld [vmem:[%s2823_s3 + $0x8] sm:$0xff] }
 0x190   :  { %v843_v33 = vunpack.c.l.b16 %v829_v43  ;;  %v841_v50 = vunpack.c.l.b16 %v828_v32 }
 0x191   :  { %v795_v15 = vpack.c.bf16 %v438_v26, %v430_v27  ;;  %v2899_v26 = vpack.c.bf16 %v2053_v41, %v2047_v34  ;;  %v2900_v41 = vpack.c.bf16 %v1965_v30, %v1959_v19  ;;  %v2484_v34 = vperm.slane %v2320_v44, 1 }
 0x192   :  { %v2451_v25 = vpack.c.b16 %v843_v33, %v843_v33 }
 0x193   :  { %963 = vmatpush.bf16.msra.mxu0 %v2894_v53  ;;  %923 = vmatpush.bf16.msrb.mxu1 %v2895_v46  ;;  %v52_v46 = vsel %vm38_vm11, %v2303_v10, %v2343_v48  ;;  %v39_v10 = vsel %vm38_vm11, %v2313_v31, %v2311_v4  ;;  %v2498_v48 = vpack.c.b16 %v841_v50, %v841_v50 }
 0x194   :  { %889 = vmatpush.bf16.msra.mxu2 %v795_v15  ;;  %v2440_v17 = vpop.permute.xlu1 %396  ;;  %v1403_v15 = vld [vmem:[%s2822_s2 + $0x30] ss:$8 sm:$0x3]  ;;  %v55_v44 = vmul.f32 %v52_v46, %v2484_v34  ;;  %v2902_v4 = vpack.c.bf16 %v2237_v62, %v2241_v60  ;;  %v2903_v31 = vpack.c.bf16 %v1706_v39, %v1653_v11  ;;  %v2904_v11 = vpack.c.bf16 %v1775_v24, %v1751_v7 }
 0x195   :  { %v2442_v40 = vpop.permute.xlu0 %394  ;;  %v594_v33 = vperm.slane %v1403_v15, 0  ;;  %v1055_v39 = vadd.f32 %v2431_v55, %v2179_v28  ;;  %v2905_v46 = vpack.c.bf16 %v2279_v18, %v2277_v23  ;;  %v2906_v24 = vpack.c.bf16 %v1896_v21, %v1870_v42  ;;  %v2907_v18 = vld [vmem:[#allocation7_spill] sm:$0xff]  ;;  %v2908_v23 = vld [vmem:[#allocation6_spill] sm:$0xff] }
 0x196   :  { %1412 = vmatmul.msk.bf16.vlgmr.msrb.gmra.mxu0 %vm853_vm15, %v2451_v25  ;;  %v399_v0 = vsel %vm398_vm3, %v2442_v40, %v2440_v17  ;;  %v2913_v21 = vld [vmem:[#allocation10_spill] sm:$0xff] }
 0x197   :  { %964 = vmatpush.bf16.msra.mxu0 %v2896_v8  ;;  %924 = vmatpush.bf16.msrb.mxu1 %v2897_v59  ;;  %v406_v2 = vmul.f32 %v402_v20, %v399_v0  ;;  %v2901_v8 = vpack.c.bf16 %v2153_v45, %v2149_v56  ;;  %v589_v30 = vpop.permute.xlu2 %588  ;;  %v595_v59 = vperm.slane %v1403_v15, 1  ;;  %v2909_v15 = vpack.c.bf16 %v2907_v18, %v2908_v23 }
 0x198   :  { %1056 = vadd.xlane.f32.xlu1 %v1055_v39 }
 0x19b   :  { %965 = vmatpush.bf16.msra.mxu0 %v816_v5  ;;  %925 = vmatpush.bf16.msrb.mxu1 %v770_v35  ;;  %v47_v35 = vmul.f32 %v2484_v34, %v39_v10  ;;  %v1532_v10 = vmov 0  }
 0x19c   :  { %v587_v27 = vpop.permute.xlu1 %586  ;;  %1455 = vset.pattern.permute.xlu2 %v1532_v10  ;;  %1456 = vset.pattern.permute.xlu0 %v1532_v10 }
 0x19d   :  { %v2470_v53 = vpop.permute.xlu0 %410  ;;  %v591_v56 = vsel %vm590_vm4, %v587_v27, %v589_v30  ;;  %v592_v45 = vsel %vm590_vm4, %v589_v30, %v587_v27  ;;  %v842_v27 = vunpack.c.h.b16 %v828_v32  ;;  %v2527_v32 = vld [vmem:[%s2821_s0] sm:$0xff]  ;;  %v2910_v30 = vld [vmem:[#allocation13_spill] sm:$0xff] }
 0x19e   :  { %v412_v38 = vsel %vm398_vm3, %v2444_v61, %v2470_v53  ;;  %v599_v50 = vmul.f32 %v595_v59, %v592_v45  ;;  %v989_v7 = vadd.f32 %v2527_v32, %v2436_v57  ;;  %v2920_v45 = vld [vmem:[#allocation15_spill] sm:$0xff] }
 0x19f   :  { %966 = vmatpush.bf16.msra.mxu0 %v2898_v13  ;;  %926 = vmatpush.bf16.msrb.mxu1 %v2899_v26  ;;  %v414_v43 = vmul.f32 %v412_v38, %v402_v20  ;;  %v762_v26 = vpack.c.bf16 %v55_v44, %v47_v35  ;;  %v598_v38 = vmul.f32 %v594_v33, %v591_v56  ;;  %v2914_v44 = vld [vmem:[#allocation11_spill] sm:$0xff] }
 0x1a0   :  { %990 = vadd.xlane.f32.xlu0 %v989_v7  ;;  %v2917_v35 = vld [vmem:[#allocation19_spill] sm:$0xff]  ;;  %v1533_v7 = vmov 256.0  }
 0x1a1   :  { %v793_v19 = vpack.c.bf16 %v414_v43, %v406_v2  ;;  %1457 = vrcp.f32 %v1533_v7 }
 0x1a3   :  { %967 = vmatpush.bf16.msra.mxu0 %v2900_v41  ;;  %927 = vmatpush.bf16.msrb.mxu1 %v2901_v8  ;;  %v847_v41 = vpack.c.b16 %v842_v27, %v842_v27  ;;  %v830_v8 = vld [vmem:[%s2824_s4] sm:$0xff]  ;;  %v2926_v27 = vld [vmem:[#allocation20_spill] sm:$0xff] }
 0x1a4   :  { %890 = vmatpush.bf16.msra.mxu2 %v793_v19  ;;  %v603_v5 = vpop.permute.xlu1 %602  ;;  %833 = vperm.xlu2 %1455, %v830_v8   ;;  %v2911_v19 = vld [vmem:[#allocation12_spill] sm:$0xff] }
 0x1a5   :  { %v601_v20 = vpop.permute.xlu0 %600  ;;  %v2912_v42 = vpack.c.bf16 %v2910_v30, %v2911_v19 }
 0x1a6   :  { %v604_v13 = vsel %vm590_vm4, %v601_v20, %v603_v5  ;;  %v605_v0 = vsel %vm590_vm4, %v603_v5, %v601_v20  ;;  %v2558_v5 = vperm.slane %v2354_v16, 1  ;;  %v2922_v20 = vld [vmem:[#allocation26_spill] sm:$0xff]  ;;  %v436_v16 = vsel %vm422_vm14, %v2399_v51, %v2394_v3 }
 0x1a7   :  { %928 = vmatpush.bf16.msrb.mxu1 %v2902_v4  ;;  %891 = vmatmul.bf16.vlgmr.msra.gmra.mxu2 %v2498_v48  ;;  %v606_v62 = vmul.f32 %v604_v13, %v594_v33  ;;  %v607_v60 = vmul.f32 %v605_v0, %v595_v59  ;;  %v2915_v33 = vpack.c.bf16 %v2913_v21, %v2914_v44  ;;  %v2916_v59 = vld [vmem:[#allocation18_spill] sm:$0xff]  ;;  %v2923_v13 = vld [vmem:[#allocation24_spill] sm:$0xff] }
 0x1a8   :  { %935 = vmatpush.bf16.msrb.mxu2 %v2903_v31  ;;  %v2918_v56 = vpack.c.bf16 %v2916_v59, %v2917_v35  ;;  %v221_v31 = vsel %vm206_vm13, %v2368_v49, %v2370_v9  ;;  %v2924_v0 = vpack.c.bf16 %v2922_v20, %v2923_v13  ;;  %v427_v49 = vperm.slane %v2385_v36, 1 }
 0x1a9   :  { %v809_v2 = vpack.c.bf16 %v606_v62, %v598_v38  ;;  %v810_v43 = vpack.c.bf16 %v607_v60, %v599_v50  ;;  %v208_v50 = vsel %vm206_vm13, %v2315_v22, %v2341_v29  ;;  %v223_v62 = vmul.f32 %v221_v31, %v2558_v5  ;;  %v2929_v22 = vld [vmem:[#allocation27_spill] sm:$0xff]  ;;  %v2930_v29 = vld [vmem:[#allocation25_spill] sm:$0xff] }
 0x1aa   :  { %v423_v9 = vsel %vm422_vm14, %v2357_v12, %v2401_v58  ;;  %v215_v60 = vmul.f32 %v2558_v5, %v208_v50  ;;  %v2931_v39 = vpack.c.bf16 %v2929_v22, %v2930_v29  ;;  %v439_v36 = vmul.f32 %v436_v16, %v427_v49 }
 0x1ab   :  { %929 = vmatpush.bf16.msrb.mxu1 %v762_v26  ;;  %903 = vmatpush.bf16.msra.mxu3 %v809_v2  ;;  %v2925_v26 = vld [vmem:[#allocation21_spill] sm:$0xff]  ;;  %v431_v3 = vmul.f32 %v427_v49, %v423_v9  ;;  %v413_v12 = vsel %vm398_vm3, %v2470_v53, %v2444_v61  ;;  %v403_v58 = vperm.slane %v2449_v63, 1 }
 0x1ac   :  { %936 = vmatpush.bf16.msrb.mxu2 %v2904_v11  ;;  %968 = vmatpush.bf16.msra.mxu0 %v810_v43  ;;  %v2927_v38 = vpack.c.bf16 %v2925_v26, %v2926_v27  ;;  %v2928_v11 = vpack.c.bf16 %v2289_v47, %v2275_v52  ;;  %v778_v51 = vpack.c.bf16 %v223_v62, %v215_v60 }
 0x1ad   :  { %v2932_v52 = vpack.c.bf16 %v2305_v54, %v2307_v1  ;;  %v400_v47 = vsel %vm398_vm3, %v2440_v17, %v2442_v40  ;;  %v1458_v17 = vpop.eup %1457 }
 0x1ae   :  { %930 = vmatmul.bf16.vlgmr.msrb.gmra.mxu1 %v2359_v14  ;;  %904 = vmatmul.bf16.vlgmr.msra.gmra.mxu3 %v847_v41  ;;  %v2919_v14 = vld [vmem:[#allocation14_spill] sm:$0xff]  ;;  %v407_v2 = vmul.f32 %v403_v58, %v400_v47  ;;  %v993_v40 = vmul.f32 256.0, %v1458_v17  ;;  %vm997_vm6 = vweird.f32 %v1458_v17 }
 0x1af   :  { %981 = vmatpush.bf16.msra.mxu1 %v2905_v46  ;;  %948 = vmatpush.bf16.msrb.mxu3 %v2909_v15  ;;  %v2921_v4 = vpack.c.bf16 %v2919_v14, %v2920_v45  ;;  %v796_v46 = vpack.c.bf16 %v439_v36, %v431_v3 }
 0x1b0   :  { %937 = vmatpush.bf16.msrb.mxu2 %v2906_v24  ;;  %969 = vmatmul.bf16.vlgmr.msra.gmra.mxu0 %v847_v41  ;;  %v994_v23 = vsub.f32 1.0, %v993_v40 }
 0x1b3   :  { %949 = vmatpush.bf16.msrb.mxu3 %v2915_v33 }
 0x1b4   :  { %938 = vmatpush.bf16.msrb.mxu2 %v2912_v42 }
 0x1b7   :  { %950 = vmatpush.bf16.msrb.mxu3 %v2921_v4 }
 0x1b8   :  { %939 = vmatpush.bf16.msrb.mxu2 %v2918_v56 }
 0x1bb   :  { %951 = vmatpush.bf16.msrb.mxu3 %v2927_v38 }
 0x1bc   :  { %940 = vmatpush.bf16.msrb.mxu2 %v2924_v0 }
 0x1be   :  { %1413 = vmatmul.msk.bf16.vlgmr.msra.gmra.mxu1 %vm853_vm15, %v2451_v25  ;;  %v415_v25 = vmul.f32 %v413_v12, %v403_v58 }
 0x1bf   :  { %952 = vmatpush.bf16.msrb.mxu3 %v2931_v39 }
 0x1c0   :  { %941 = vmatpush.bf16.msrb.mxu2 %v2928_v11  ;;  %v794_v43 = vpack.c.bf16 %v415_v25, %v407_v2 }
 0x1c3   :  { %953 = vmatpush.bf16.msrb.mxu3 %v2932_v52 }
 0x1c4   :  { %942 = vmatpush.bf16.msrb.mxu2 %v778_v51 }
 0x1c7   :  { %943 = vmatmul.bf16.vlgmr.msrb.gmra.mxu2 %v2387_v37  ;;  %954 = vmatpush.bf16.msrb.mxu3 %v796_v46  ;;  %v995_v37 = vmul.f32 %v1458_v17, %v994_v23 }
 0x1c9   :  { %v996_v15 = vadd.f32 %v1458_v17, %v995_v37 }
 0x1cb   :  { %955 = vmatpush.bf16.msrb.mxu3 %v794_v43  ;;  %v2603_v8 = vsel %vm997_vm6, %v1458_v17, %v996_v15 }
 0x1ce   :  { %956 = vmatmul.bf16.vlgmr.msrb.gmra.mxu3 %v2498_v48 }
 0x1fe   :  { %v834_v63 = vpop.permute.xlu2 %833 }
 0x203   :  { %v866_v61 = vpop.f32.mrf.mxu0 }
 0x204   :  { %v867_v53 = vadd.f32 %v866_v61, %v834_v63 }
 0x20b   :  { %v879_v54 = vpop.f32.mrf.mxu1  ;;  %v868_v1 = vpop.f32.mrf.mxu0 }
 0x20c   :  { %v880_v41 = vadd.f32 %v879_v54, %v867_v53  ;;  %v1057_v10 = vpop.xlane.xlu1 %1056 }
 0x20d   :  { %v1058_v48 = vmul.f32 %v1057_v10, %v2603_v8 }
 0x20f   :  { %v1059_v19 = vsub.f32 %v2179_v28, %v1058_v48  ;;  %v1060_v42 = vsub.f32 %v2431_v55, %v1058_v48 }
 0x211   :  { %v1061_v21 = vmul.f32 %v1059_v19, %v1059_v19  ;;  %v1062_v44 = vmul.f32 %v1060_v42, %v1060_v42 }
 0x213   :  { %v881_v24 = vpop.f32.mrf.mxu1  ;;  %v918_v18 = vpop.f32.mrf.mxu0  ;;  %v1063_v33 = vadd.f32 %v1062_v44, %v1061_v21 }
 0x214   :  { %v991_v49 = vpop.xlane.xlu0 %990 }
 0x215   :  { %1064 = vadd.xlane.f32.xlu0 %v1063_v33  ;;  %v999_v29 = vmul.f32 %v2603_v8, %v991_v49 }
 0x217   :  { %v1000_v51 = vsub.f32 %v2527_v32, %v999_v29  ;;  %v1001_v12 = vsub.f32 %v2436_v57, %v999_v29 }
 0x219   :  { %v1002_v47 = vmul.f32 %v1000_v51, %v1000_v51  ;;  %v1003_v25 = vmul.f32 %v1001_v12, %v1001_v12 }
 0x21b   :  { %v920_v30 = vpop.f32.mrf.mxu0  ;;  %v1004_v46 = vadd.f32 %v1003_v25, %v1002_v47 }
 0x22a   :  { %v892_v59 = vpop.f32.mrf.mxu2 }
 0x22b   :  { %v931_v35 = vpop.f32.mrf.mxu1  ;;  %v893_v27 = vadd.f32 %v892_v59, %v880_v41 }
 0x22c   :  { %v932_v38 = vadd.f32 %v931_v35, %v834_v63 }
 0x22d   :  { %v970_v56 = vpop.f32.mrf.mxu0 }
 0x231   :  { %v905_v14 = vpop.f32.mrf.mxu3 }
 0x232   :  { %v894_v45 = vpop.f32.mrf.mxu2  ;;  %v906_v50 = vadd.f32 %v905_v14, %v893_v27 }
 0x233   :  { %v933_v4 = vpop.f32.mrf.mxu1 }
 0x234   :  { %v919_v11 = vadd.f32 %v918_v18, %v906_v50 }
 0x235   :  { %v972_v31 = vpop.f32.mrf.mxu0 }
 0x236   :  { %v2609_v36 = vmax.f32 %v919_v11, 0.0 }
 0x239   :  { %v907_v20 = vpop.f32.mrf.mxu3 }
 0x23b   :  { %v983_v13 = vpop.f32.mrf.mxu1 }
 0x243   :  { %v985_v0 = vpop.f32.mrf.mxu1 }
 0x24a   :  { %v944_v26 = vpop.f32.mrf.mxu2 }
 0x24b   :  { %v945_v62 = vadd.f32 %v944_v26, %v932_v38 }
 0x251   :  { %v957_v9 = vpop.f32.mrf.mxu3 }
 0x252   :  { %v946_v16 = vpop.f32.mrf.mxu2  ;;  %v958_v60 = vadd.f32 %v957_v9, %v945_v62 }
 0x254   :  { %v971_v22 = vadd.f32 %v970_v56, %v958_v60 }
 0x256   :  { %v984_v39 = vadd.f32 %v983_v13, %v971_v22 }
 0x258   :  { %v2611_v3 = vmax.f32 %v984_v39, 0.0 }
 0x259   :  { %v959_v58 = vpop.f32.mrf.mxu3 }
 0x25a   :  { %v1114_v52 = vadd.f32 %v2611_v3, %v2609_v36 }
 0x25c   :  { %1115 = vadd.xlane.f32.xlu2 %v1114_v52 }
 0x264   :  { %1005 = vadd.xlane.f32.xlu2 %v1004_v46 }
 0x288   :  { %v1065_v7 = vpop.xlane.xlu0 %1064 }
 0x289   :  { %v1066_v17 = vmul.f32 0.003921569, %v1065_v7 }
 0x28b   :  { %v1067_v18 = vadd.f32 0.0001, %v1066_v17 }
 0x28d   :  { %v1068_v37 = vmul.f32 4.0, %v1067_v18 }
 0x2cf   :  { %v1116_v2 = vpop.xlane.xlu2 %1115 }
 0x2d0   :  { %v1117_v43 = vmul.f32 %v1116_v2, %v2603_v8 }
 0x2d2   :  { %v1118_v61 = vsub.f32 %v2609_v36, %v1117_v43  ;;  %v1119_v63 = vsub.f32 %v2611_v3, %v1117_v43 }
 0x2d4   :  { %v1120_v53 = vmul.f32 %v1118_v61, %v1118_v61  ;;  %v1121_v54 = vmul.f32 %v1119_v63, %v1119_v63 }
 0x2d6   :  { %v1122_v1 = vadd.f32 %v1121_v54, %v1120_v53 }
 0x2d7   :  { %v1006_v41 = vpop.xlane.xlu2 %1005 }
 0x2d8   :  { %1123 = vadd.xlane.f32.xlu1 %v1122_v1  ;;  %v1007_v24 = vmul.f32 0.003921569, %v1006_v41 }
 0x2da   :  { %v1008_v40 = vadd.f32 0.0001, %v1007_v24 }
 0x2dc   :  { %v1009_v23 = vmul.f32 4.0, %v1008_v40 }
 0x2de   :  { %1459 = vrcp.f32 %v1009_v23 }
 0x2df   :  { %1461 = vrcp.f32 %v1068_v37 }
 0x2e4   :  { %v1460_v15 = vpop.eup %1459 }
 0x2e5   :  { %v1462_v10 = vpop.eup %1461  ;;  %v1011_v48 = vmul.f32 %v1460_v15, %v1002_v47  ;;  %v1012_v30 = vmul.f32 %v1460_v15, %v1003_v25 }
 0x2e6   :  { %v1070_v19 = vmul.f32 %v1462_v10, %v1061_v21  ;;  %v1071_v42 = vmul.f32 %v1462_v10, %v1062_v44 }
 0x2e7   :  { %v1013_v33 = vadd.f32 0.5, %v1011_v48  ;;  %v1014_v59 = vadd.f32 0.5, %v1012_v30 }
 0x2e8   :  { %v1072_v35 = vadd.f32 0.5, %v1070_v19  ;;  %v1073_v56 = vadd.f32 0.5, %v1071_v42 }
 0x2e9   :  { %v1414_v14 = vmul.f32 -1.442695, %v1013_v33  ;;  %v1415_v45 = vmul.f32 -1.442695, %v1014_v59 }
 0x2ea   :  { %v1416_v4 = vmul.f32 -1.442695, %v1072_v35  ;;  %v1417_v31 = vmul.f32 -1.442695, %v1073_v56 }
 0x2eb   :  { %1463 = vpow2.f32 %v1414_v14 }
 0x2ec   :  { %1465 = vpow2.f32 %v1415_v45  ;;  %v2945_v45 = vld [vmem:[#allocation31_spill] sm:$0xff] }
 0x2ed   :  { %1467 = vpow2.f32 %v1416_v4 }
 0x2ee   :  { %1469 = vpow2.f32 %v1417_v31 }
 0x2f1   :  { %v1464_v0 = vpop.eup %1463 }
 0x2f2   :  { %v1466_v27 = vpop.eup %1465  ;;  %v2620_v50 = vadd.f32 1.0, %v1464_v0 }
 0x2f3   :  { %v1468_v38 = vpop.eup %1467  ;;  %v2622_v62 = vadd.f32 1.0, %v1466_v27 }
 0x2f4   :  { %v1470_v44 = vpop.eup %1469  ;;  %v1080_v49 = vadd.f32 1.0, %v1468_v38  ;;  %vm1028_vm7 = vweird.f32 %v2620_v50  ;;  %v1034_v35 = vand.u32 2147483648, %v2620_v50  ;;  %v1032_v4 = vand.u32 2147483647, %v2620_v50 }
 0x2f5   :  { %v2624_v16 = vadd.f32 1.0, %v1470_v44  ;;  %v1049_v56 = vand.u32 2147483648, %v2622_v62  ;;  %v1047_v31 = vand.u32 2147483647, %v2622_v62 }
 0x2f6   :  { %vm1087_vm8 = vweird.f32 %v1080_v49  ;;  %v1091_v37 = vand.u32 2147483647, %v1080_v49  ;;  %v1093_v15 = vand.u32 2147483648, %v1080_v49 }
 0x2f7   :  { %vm1102_vm10 = vweird.f32 %v2624_v16  ;;  %v1106_v10 = vand.u32 2147483647, %v2624_v16  ;;  %v1108_v30 = vand.u32 2147483648, %v2624_v16 }
 0x2f8   :  { %v1094_v0 = vor.u32 1.1754944e-38, %v1093_v15 }
 0x34b   :  { %v1124_v20 = vpop.xlane.xlu1 %1123 }
 0x34c   :  { %v1125_v13 = vmul.f32 0.003921569, %v1124_v20 }
 0x34e   :  { %v1126_v26 = vadd.f32 0.0001, %v1125_v13 }
 0x350   :  { %v1127_v21 = vmul.f32 4.0, %v1126_v26 }
 0x352   :  { %1471 = vrcp.f32 %v1127_v21  ;;  %v1109_v21 = vor.u32 1.1754944e-38, %v1108_v30 }
 0x353   :  { %1473 = vrcp.f32 %v2620_v50 }
 0x354   :  { %1475 = vrcp.f32 %v2622_v62 }
 0x355   :  { %1477 = vrcp.f32 %v1080_v49 }
 0x356   :  { %1479 = vrcp.f32 %v2624_v16 }
 0x358   :  { %v1472_v9 = vpop.eup %1471 }
 0x359   :  { %v1129_v60 = vmul.f32 %v1472_v9, %v1120_v53  ;;  %v1130_v11 = vmul.f32 %v1472_v9, %v1121_v54  ;;  %v2629_v22 = vpop.eup %1473  ;;  %v1050_v9 = vor.u32 1.1754944e-38, %v1049_v56 }
 0x35a   :  { %v2631_v51 = vpop.eup %1475  ;;  %v1024_v25 = vmul.f32 %v2629_v22, %v2620_v50  ;;  %vm1029_vm15 = vweird.f32 %v2629_v22 }
 0x35b   :  { %v1131_v29 = vadd.f32 0.5, %v1129_v60  ;;  %v1132_v39 = vadd.f32 0.5, %v1130_v11  ;;  %v2633_v12 = vpop.eup %1477  ;;  %v1039_v46 = vmul.f32 %v2631_v51, %v2622_v62  ;;  %vm1044_vm4 = vweird.f32 %v2631_v51 }
 0x35c   :  { %v2635_v47 = vpop.eup %1479  ;;  %v1083_v2 = vmul.f32 %v2633_v12, %v1080_v49  ;;  %v1025_v61 = vsub.f32 1.0, %v1024_v25  ;;  %vm1088_vm9 = vweird.f32 %v2633_v12 }
 0x35d   :  { %v1418_v58 = vmul.f32 -1.442695, %v1131_v29  ;;  %v1419_v52 = vmul.f32 -1.442695, %v1132_v39  ;;  %v1098_v43 = vmul.f32 %v2635_v47, %v2624_v16  ;;  %v1040_v63 = vsub.f32 1.0, %v1039_v46  ;;  %vm2659_vm3 = vmor %vm1087_vm8, %vm1088_vm9 }
 0x35e   :  { %v1084_v53 = vsub.f32 1.0, %v1083_v2  ;;  %v1026_v24 = vmul.f32 %v2629_v22, %v1025_v61  ;;  %vm1103_vm14 = vweird.f32 %v2635_v47  ;;  %vm2676_vm8 = vmor %vm1028_vm7, %vm1029_vm15  ;;  %vm1043_vm9 = vweird.f32 %v2622_v62 }
 0x35f   :  { %1481 = vpow2.f32 %v1418_v58  ;;  %v1099_v1 = vsub.f32 1.0, %v1098_v43  ;;  %v1041_v17 = vmul.f32 %v2631_v51, %v1040_v63  ;;  %vm2668_vm6 = vmor %vm1102_vm10, %vm1103_vm14  ;;  %vm2683_vm10 = vcmp.eq.f32.partialorder %v1091_v37, 8.507059e+37 }
 0x360   :  { %1483 = vpow2.f32 %v1419_v52  ;;  %v1085_v18 = vmul.f32 %v2633_v12, %v1084_v53  ;;  %v1027_v19 = vadd.f32 %v2629_v22, %v1026_v24  ;;  %vm2687_vm14 = vcmp.eq.f32.partialorder %v1106_v10, 8.507059e+37  ;;  %vm2693_vm7 = vmor %vm1043_vm9, %vm1044_vm4 }
 0x361   :  { %v1100_v23 = vmul.f32 %v2635_v47, %v1099_v1  ;;  %v1042_v42 = vadd.f32 %v2631_v51, %v1041_v17  ;;  %v1035_v16 = vor.u32 1.1754944e-38, %v1034_v35  ;;  %vm1033_vm15 = vcmp.eq.f32.partialorder %v1032_v4, 8.507059e+37 }
 0x362   :  { %v1086_v33 = vadd.f32 %v2633_v12, %v1085_v18  ;;  %v1031_v44 = vsel %vm2676_vm8, %v2629_v22, %v1027_v19  ;;  %vm1048_vm4 = vcmp.eq.f32.partialorder %v1047_v31, 8.507059e+37 }
 0x363   :  { %v1101_v14 = vadd.f32 %v2635_v47, %v1100_v23  ;;  %v1046_v50 = vsel %vm2693_vm7, %v2631_v51, %v1042_v42  ;;  %v1036_v29 = vsel %vm1033_vm15, %v1035_v16, %v1031_v44 }
 0x364   :  { %v1090_v49 = vsel %vm2659_vm3, %v2633_v12, %v1086_v33  ;;  %v1051_v39 = vsel %vm1048_vm4, %v1050_v9, %v1046_v50  ;;  %v1053_v61 = vmul.f32 %v2527_v32, %v1036_v29  ;;  %vm1268_vm4 = vcmask 1043456   ;;  %v2947_v9 = vld [vmem:[#allocation2_spill] sm:$0xff]  ;;  %v2949_v29 = vld [vmem:[#allocation5_spill] sm:$0xff] }
 0x365   :  { %v1482_v54 = vpop.eup %1481  ;;  %v1105_v11 = vsel %vm2668_vm6, %v2635_v47, %v1101_v14  ;;  %v1095_v46 = vsel %vm2683_vm10, %v1094_v0, %v1090_v49  ;;  %v1054_v53 = vmul.f32 %v2436_v57, %v1051_v39  ;;  %v2946_v49 = vld [vmem:[#allocation3_spill] sm:$0xff] }
 0x366   :  { %v1484_v41 = vpop.eup %1483  ;;  %v2644_v7 = vadd.f32 1.0, %v1482_v54  ;;  %v1110_v43 = vsel %vm2687_vm14, %v1109_v21, %v1105_v11  ;;  %v2948_v11 = vld [vmem:[#allocation4_spill] sm:$0xff] }
 0x367   :  { %v2648_v40 = vadd.f32 1.0, %v1484_v41  ;;  %v1112_v41 = vmul.f32 %v2179_v28, %v1095_v46  ;;  %v1113_v18 = vmul.f32 %v2431_v55, %v1110_v43 }
 0x368   :  { %1485 = vrcp.f32 %v2644_v7  ;;  %v1152_v51 = vand.u32 2147483648, %v2644_v7  ;;  %v1150_v12 = vand.u32 2147483647, %v2644_v7  ;;  %vm1146_vm6 = vweird.f32 %v2644_v7 }
 0x369   :  { %1487 = vrcp.f32 %v2648_v40  ;;  %v1167_v25 = vand.u32 2147483648, %v2648_v40  ;;  %v1165_v47 = vand.u32 2147483647, %v2648_v40  ;;  %vm1161_vm7 = vweird.f32 %v2648_v40 }
 0x36a   :  { %v1153_v54 = vor.u32 1.1754944e-38, %v1152_v51  ;;  %vm1151_vm10 = vcmp.eq.f32.partialorder %v1150_v12, 8.507059e+37  ;;  %v1177_v15 = vadd.f32 %v1112_v41, %v1053_v61  ;;  %v1178_v48 = vadd.f32 %v1113_v18, %v1054_v53  ;;  %v2951_v61 = vld [vmem:[#allocation9_spill] sm:$0xff] }
 0x36b   :  { %v1168_v17 = vor.u32 1.1754944e-38, %v1167_v25  ;;  %vm1166_vm14 = vcmp.eq.f32.partialorder %v1165_v47, 8.507059e+37  ;;  %v2950_v47 = vld [vmem:[#allocation8_spill] sm:$0xff] }
 0x36c   :  { %v1179_v42 = vmul.f32 %v1177_v15, %v2609_v36  ;;  %v1180_v59 = vmul.f32 %v1178_v48, %v2611_v3  ;;  %v2952_v15 = vld [vmem:[#allocation16_spill] sm:$0xff] }
 0x36e   :  { %v1486_v20 = vpop.eup %1485 }
 0x36f   :  { %v1488_v38 = vpop.eup %1487  ;;  %v1142_v62 = vmul.f32 %v1486_v20, %v2644_v7  ;;  %vm1147_vm8 = vweird.f32 %v1486_v20 }
 0x370   :  { %v1157_v60 = vmul.f32 %v1488_v38, %v2648_v40  ;;  %vm1162_vm3 = vweird.f32 %v1488_v38  ;;  %vm1148_vm9 = vmor %vm1146_vm6, %vm1147_vm8 }
 0x371   :  { %v1143_v22 = vsub.f32 1.0, %v1142_v62  ;;  %vm1163_vm15 = vmor %vm1161_vm7, %vm1162_vm3 }
 0x372   :  { %v1158_v58 = vsub.f32 1.0, %v1157_v60 }
 0x373   :  { %v1144_v52 = vmul.f32 %v1486_v20, %v1143_v22 }
 0x374   :  { %v1159_v2 = vmul.f32 %v1488_v38, %v1158_v58 }
 0x375   :  { %v1145_v63 = vadd.f32 %v1486_v20, %v1144_v52 }
 0x376   :  { %v1160_v1 = vadd.f32 %v1488_v38, %v1159_v2 }
 0x377   :  { %v1149_v24 = vsel %vm1148_vm9, %v1486_v20, %v1145_v63 }
 0x378   :  { %v1154_v23 = vsel %vm1151_vm10, %v1153_v54, %v1149_v24  ;;  %v1164_v37 = vsel %vm1163_vm15, %v1488_v38, %v1160_v1 }
 0x379   :  { %v1169_v7 = vsel %vm1166_vm14, %v1168_v17, %v1164_v37  ;;  %v1171_v10 = vmul.f32 %v1154_v23, %v2609_v36 }
 0x37a   :  { %v1172_v30 = vmul.f32 %v1169_v7, %v2611_v3 }
 0x37b   :  { %v1173_v40 = vadd.f32 %v2527_v32, %v1171_v10  ;;  %v2953_v10 = vld [vmem:[#allocation17_spill] sm:$0xff] }
 0x37c   :  { %v1174_v19 = vadd.f32 %v2436_v57, %v1172_v30  ;;  %v2954_v30 = vld [vmem:[#allocation22_spill] sm:$0xff] }
 0x37d   :  { %v1175_v33 = vadd.f32 %v2179_v28, %v1173_v40  ;;  %v1258_v28 = vld [vmem:[%s2825_s6] sm:$0xff] }
 0x37e   :  { %v1176_v35 = vadd.f32 %v2431_v55, %v1174_v19  ;;  %v2955_v19 = vld [vmem:[#allocation23_spill] sm:$0xff] }
 0x37f   :  { %v1181_v56 = vadd.f32 %v1179_v42, %v1175_v33 }
 0x380   :  { %v1182_v14 = vadd.f32 %v1180_v59, %v1176_v35 }
 0x381   :  { %1223 = vrot.lane.b32.xlu1 %v1181_v56, %s1505_s11  ;;  %1239 = vrot.lane.b32.xlu2 %v1181_v56, %s1528_s9 }
 0x382   :  { %1241 = vrot.lane.b32.xlu0 %v1182_v14, %s1528_s9 }
 0x389   :  { %1233 = vrot.lane.b32.xlu1 %v1182_v14, %s1503_s28  ;;  %1231 = vrot.lane.b32.xlu2 %v1181_v56, %s1503_s28 }
 0x38a   :  { %1225 = vrot.lane.b32.xlu0 %v1182_v14, %s1505_s11 }
 0x391   :  { %1199 = vrot.lane.b32.xlu1 %v1181_v56, %s1519_s17  ;;  %1217 = vrot.lane.b32.xlu2 %v1182_v14, %s1508_s14 }
 0x392   :  { %1215 = vrot.lane.b32.xlu0 %v1181_v56, %s1508_s14 }
 0x399   :  { %1209 = vrot.lane.b32.xlu1 %v1182_v14, %s1515_s25  ;;  %1207 = vrot.lane.b32.xlu2 %v1181_v56, %s1515_s25 }
 0x39a   :  { %1201 = vrot.lane.b32.xlu0 %v1182_v14, %s1519_s17 }
 0x3a1   :  { %1191 = vrot.lane.b32.xlu1 %v1181_v56, %s1523_s10  ;;  %1185 = vrot.lane.b32.xlu2 %v1182_v14, %s1527_s29 }
 0x3a2   :  { %1183 = vrot.lane.b32.xlu0 %v1181_v56, %s1527_s29 }
 0x3a9   :  { %1261 = vperm.xlu2 %1455, %v1258_v28  }
 0x3aa   :  { %1193 = vrot.lane.b32.xlu0 %v1182_v14, %s1523_s10 }
 0x3db   :  { %v1240_v55 = vpop.permute.xlu2 %1239 }
 0x3e3   :  { %v1232_v20 = vpop.permute.xlu2 %1231 }
 0x3eb   :  { %v1218_v52 = vpop.permute.xlu2 %1217 }
 0x3f3   :  { %v1224_v57 = vpop.permute.xlu1 %1223  ;;  %v1208_v1 = vpop.permute.xlu2 %1207 }
 0x3f4   :  { %v1242_v32 = vpop.permute.xlu0 %1241 }
 0x3f5   :  { %v1243_v36 = vsel %vm206_vm13, %v1240_v55, %v1242_v32  ;;  %v1244_v3 = vsel %vm206_vm13, %v1242_v32, %v1240_v55 }
 0x3f6   :  { %v1245_v4 = vmul.f32 %v1243_v36, %v2945_v45  ;;  %v1246_v31 = vmul.f32 %v1244_v3, %v2558_v5  ;;  %v2958_v3 = vld [vmem:[#allocation30_spill] sm:$0xff] }
 0x3f8   :  { %v1255_v13 = vpack.c.bf16 %v1245_v4, %v1245_v4  ;;  %v1256_v0 = vpack.c.bf16 %v1246_v31, %v1246_v31  ;;  %v2959_v31 = vld [vmem:[#allocation28_spill] sm:$0xff] }
 0x3fa   :  { %v1270_v26 = vsel %vm1268_vm4, %v1255_v13, 0  ;;  %v1273_v27 = vsel %vm1268_vm4, %v1256_v0, 0  ;;  %v2960_v13 = vld [vmem:[#allocation29_spill] sm:$0xff] }
 0x3fb   :  { %1278 = vmatpush.bf16.msra.mxu2 %v1270_v26  ;;  %1291 = vmatpush.bf16.msra.mxu3 %v1273_v27  ;;  %v1234_v38 = vpop.permute.xlu1 %1233 }
 0x3fc   :  { %v1226_v21 = vpop.permute.xlu0 %1225  ;;  %v1235_v44 = vsel %vm182_vm1, %v1232_v20, %v1234_v38  ;;  %v1236_v50 = vsel %vm182_vm1, %v1234_v38, %v1232_v20  ;;  %vm2956_vm1 = vcmp.lt.s32.totalorder %v1642_v6, 16  ;;  %v1257_v38 = vld [vmem:[%s2826_s5] sm:$0xf] }
 0x3fd   :  { %v1227_v62 = vsel %vm158_vm2, %v1224_v57, %v1226_v21  ;;  %v1228_v5 = vsel %vm158_vm2, %v1226_v21, %v1224_v57  ;;  %v1237_v16 = vmul.f32 %v1235_v44, %v2946_v49  ;;  %v1238_v60 = vmul.f32 %v1236_v50, %v2947_v9  ;;  %vm2957_vm2 = vmmov %vm2956_vm1 }
 0x3fe   :  { %v1229_v22 = vmul.f32 %v1227_v62, %v2948_v11  ;;  %v1230_v39 = vmul.f32 %v1228_v5, %v2949_v29 }
 0x400   :  { %v1253_v51 = vpack.c.bf16 %v1237_v16, %v1229_v22  ;;  %v1254_v58 = vpack.c.bf16 %v1238_v60, %v1230_v39 }
 0x402   :  { %1279 = vmatpush.bf16.msra.mxu2 %v1253_v51  ;;  %1292 = vmatpush.bf16.msra.mxu3 %v1254_v58 }
 0x403   :  { %v1200_v12 = vpop.permute.xlu1 %1199 }
 0x404   :  { %v1216_v25 = vpop.permute.xlu0 %1215 }
 0x405   :  { %v1219_v46 = vsel %vm134_vm5, %v1216_v25, %v1218_v52  ;;  %v1220_v2 = vsel %vm134_vm5, %v1218_v52, %v1216_v25  ;;  %vm1264_vm5 = vcmask 588800  }
 0x406   :  { %v1221_v43 = vmul.f32 %v1219_v46, %v2950_v47  ;;  %v1222_v63 = vmul.f32 %v1220_v2, %v2951_v61 }
 0x408   :  { %v1251_v53 = vpack.c.bf16 %v1221_v43, %v1181_v56  ;;  %v1252_v54 = vpack.c.bf16 %v1222_v63, %v1182_v14  ;;  %v1186_v56 = vpop.permute.xlu2 %1185 }
 0x40a   :  { %1280 = vmatpush.bf16.msra.mxu2 %v1251_v53  ;;  %1293 = vmatpush.bf16.msra.mxu3 %v1252_v54 }
 0x40b   :  { %v1210_v41 = vpop.permute.xlu1 %1209 }
 0x40c   :  { %v1202_v24 = vpop.permute.xlu0 %1201  ;;  %v1211_v17 = vsel %vm110_vm12, %v1208_v1, %v1210_v41  ;;  %v1212_v18 = vsel %vm110_vm12, %v1210_v41, %v1208_v1 }
 0x40d   :  { %v1203_v23 = vsel %vm86_vm0, %v1200_v12, %v1202_v24  ;;  %v1204_v37 = vsel %vm86_vm0, %v1202_v24, %v1200_v12  ;;  %v1213_v7 = vmul.f32 %v1212_v18, %v2952_v15  ;;  %v1214_v48 = vmul.f32 %v1211_v17, %v2953_v10 }
 0x40e   :  { %v1205_v40 = vmul.f32 %v1204_v37, %v2954_v30  ;;  %v1206_v42 = vmul.f32 %v1203_v23, %v2955_v19 }
 0x410   :  { %v1249_v33 = vpack.c.bf16 %v1213_v7, %v1205_v40  ;;  %v1250_v59 = vpack.c.bf16 %v1214_v48, %v1206_v42  ;;  %v1262_v6 = vpop.permute.xlu2 %1261 }
 0x412   :  { %1281 = vmatpush.bf16.msra.mxu2 %v1249_v33  ;;  %1294 = vmatpush.bf16.msra.mxu3 %v1250_v59 }
 0x413   :  { %v1192_v55 = vpop.permute.xlu1 %1191 }
 0x414   :  { %v1184_v35 = vpop.permute.xlu0 %1183 }
 0x415   :  { %v1187_v14 = vsel %vm38_vm11, %v1184_v35, %v1186_v56  ;;  %v1188_v28 = vsel %vm38_vm11, %v1186_v56, %v1184_v35 }
 0x416   :  { %v1189_v45 = vmul.f32 %v1188_v28, %v2958_v3  ;;  %v1190_v4 = vmul.f32 %v1187_v14, %v2484_v34 }
 0x41c   :  { %v1194_v57 = vpop.permute.xlu0 %1193 }
 0x41d   :  { %v1195_v32 = vsel %vm2956_vm1, %v1192_v55, %v1194_v57  ;;  %v1196_v36 = vsel %vm2957_vm2, %v1194_v57, %v1192_v55 }
 0x41e   :  { %v1197_v20 = vmul.f32 %v1196_v36, %v2959_v31  ;;  %v1198_v0 = vmul.f32 %v1195_v32, %v2960_v13 }
 0x420   :  { %v1247_v26 = vpack.c.bf16 %v1197_v20, %v1189_v45  ;;  %v1248_v27 = vpack.c.bf16 %v1198_v0, %v1190_v4 }
 0x422   :  { %1282 = vmatpush.bf16.msra.mxu2 %v1247_v26  ;;  %1295 = vmatpush.bf16.msra.mxu3 %v1248_v27 }
 0x425   :  { %1420 = vmatmul.msk.bf16.vlgmr.msra.gmra.mxu2 %vm1264_vm5, %v1257_v38  ;;  %1421 = vmatmul.msk.bf16.vlgmr.msra.gmra.mxu3 %vm1264_vm5, %v1257_v38 }
 0x4a8   :  { %v1284_v21 = vpop.f32.mrf.mxu2  ;;  %v1297_v44 = vpop.f32.mrf.mxu3 }
 0x4a9   :  { %v1285_v50 = vadd.f32 %v1284_v21, %v1262_v6  ;;  %v1298_v34 = vadd.f32 %v1297_v44, %v1262_v6 }
 0x4ab   :  { %v2803_v62 = vmax.f32 %v1285_v50, 0.0  ;;  %v2805_v5 = vmax.f32 %v1298_v34, 0.0 }
 0x4ad   :  { %v1303_v49 = vadd.f32 %v2805_v5, %v2803_v62 }
 0x4af   :  { %1304 = vadd.xlane.f32.xlu1 %v1303_v49 }
 0x4b0   :  { %v1286_v16 = vpop.f32.mrf.mxu2  ;;  %v1299_v9 = vpop.f32.mrf.mxu3 }
 0x522   :  { %v1305_v60 = vpop.xlane.xlu1 %1304 }
 0x523   :  { %v1306_v11 = vmul.f32 %v1305_v60, %v2603_v8 }
 0x525   :  { %v1307_v22 = vsub.f32 %v2803_v62, %v1306_v11  ;;  %v1308_v29 = vsub.f32 %v2805_v5, %v1306_v11 }
 0x527   :  { %v1309_v39 = vmul.f32 %v1307_v22, %v1307_v22  ;;  %v1310_v51 = vmul.f32 %v1308_v29, %v1308_v29 }
 0x529   :  { %v1311_v58 = vadd.f32 %v1310_v51, %v1309_v39 }
 0x52b   :  { %1312 = vadd.xlane.f32.xlu0 %v1311_v58 }
 0x59e   :  { %v1313_v52 = vpop.xlane.xlu0 %1312 }
 0x59f   :  { %v1314_v12 = vmul.f32 0.003921569, %v1313_v52 }
 0x5a1   :  { %v1315_v25 = vadd.f32 0.0001, %v1314_v12 }
 0x5a3   :  { %v1316_v46 = vmul.f32 4.0, %v1315_v25 }
 0x5a5   :  { %1489 = vrcp.f32 %v1316_v46  ;;  %v1328_v61 = vand.u32 2147483648, %v1316_v46  ;;  %v1326_v8 = vand.u32 2147483647, %v1316_v46  ;;  %vm1322_vm0 = vweird.f32 %v1316_v46 }
 0x5a7   :  { %v1329_v54 = vor.u32 1.1754944e-38, %v1328_v61  ;;  %vm1327_vm13 = vcmp.eq.f32.partialorder %v1326_v8, 8.507059e+37 }
 0x5ab   :  { %v1490_v2 = vpop.eup %1489 }
 0x5ac   :  { %v1318_v47 = vmul.f32 %v1490_v2, %v1316_v46  ;;  %vm1323_vm12 = vweird.f32 %v1490_v2 }
 0x5ad   :  { %vm1324_vm11 = vmor %vm1322_vm0, %vm1323_vm12 }
 0x5ae   :  { %v1319_v43 = vsub.f32 1.0, %v1318_v47 }
 0x5b0   :  { %v1320_v63 = vmul.f32 %v1490_v2, %v1319_v43 }
 0x5b2   :  { %v1321_v53 = vadd.f32 %v1490_v2, %v1320_v63 }
 0x5b4   :  { %v1325_v1 = vsel %vm1324_vm11, %v1490_v2, %v1321_v53 }
 0x5b5   :  { %v1330_v41 = vsel %vm1327_vm13, %v1329_v54, %v1325_v1 }
 0x5b6   :  { %v1331_v24 = vmul.f32 %v1330_v41, %v1309_v39  ;;  %v1332_v17 = vmul.f32 %v1330_v41, %v1310_v51 }
 0x5b8   :  { %v1333_v18 = vadd.f32 0.5, %v1331_v24  ;;  %v1334_v23 = vadd.f32 0.5, %v1332_v17 }
 0x5ba   :  { %v1422_v37 = vmul.f32 -1.442695, %v1333_v18  ;;  %v1423_v15 = vmul.f32 -1.442695, %v1334_v23 }
 0x5bc   :  { %1491 = vpow2.f32 %v1422_v37 }
 0x5bd   :  { %1493 = vpow2.f32 %v1423_v15 }
 0x5c2   :  { %v1492_v7 = vpop.eup %1491 }
 0x5c3   :  { %v1494_v10 = vpop.eup %1493  ;;  %v1341_v48 = vadd.f32 1.0, %v1492_v7 }
 0x5c4   :  { %v1342_v30 = vadd.f32 1.0, %v1494_v10 }
 0x5c5   :  { %1495 = vrcp.f32 %v1341_v48  ;;  %v1354_v35 = vand.u32 2147483648, %v1341_v48  ;;  %v1352_v28 = vand.u32 2147483647, %v1341_v48  ;;  %vm1348_vm6 = vweird.f32 %v1341_v48 }
 0x5c6   :  { %1497 = vrcp.f32 %v1342_v30  ;;  %v1369_v55 = vand.u32 2147483648, %v1342_v30  ;;  %v1367_v32 = vand.u32 2147483647, %v1342_v30  ;;  %vm1363_vm7 = vweird.f32 %v1342_v30 }
 0x5c7   :  { %v1355_v3 = vor.u32 1.1754944e-38, %v1354_v35  ;;  %vm1353_vm10 = vcmp.eq.f32.partialorder %v1352_v28, 8.507059e+37 }
 0x5c8   :  { %v1370_v31 = vor.u32 1.1754944e-38, %v1369_v55  ;;  %vm1368_vm14 = vcmp.eq.f32.partialorder %v1367_v32, 8.507059e+37 }
 0x5cb   :  { %v1496_v40 = vpop.eup %1495 }
 0x5cc   :  { %v1498_v19 = vpop.eup %1497  ;;  %v1344_v42 = vmul.f32 %v1496_v40, %v1341_v48  ;;  %vm1349_vm8 = vweird.f32 %v1496_v40 }
 0x5cd   :  { %v1359_v33 = vmul.f32 %v1498_v19, %v1342_v30  ;;  %vm1364_vm3 = vweird.f32 %v1498_v19  ;;  %vm1350_vm9 = vmor %vm1348_vm6, %vm1349_vm8 }
 0x5ce   :  { %v1345_v59 = vsub.f32 1.0, %v1344_v42  ;;  %vm1365_vm15 = vmor %vm1363_vm7, %vm1364_vm3 }
 0x5cf   :  { %v1360_v56 = vsub.f32 1.0, %v1359_v33 }
 0x5d0   :  { %v1346_v14 = vmul.f32 %v1496_v40, %v1345_v59 }
 0x5d1   :  { %v1361_v57 = vmul.f32 %v1498_v19, %v1360_v56 }
 0x5d2   :  { %v1347_v36 = vadd.f32 %v1496_v40, %v1346_v14 }
 0x5d3   :  { %v1362_v45 = vadd.f32 %v1498_v19, %v1361_v57 }
 0x5d4   :  { %v1351_v4 = vsel %vm1350_vm9, %v1496_v40, %v1347_v36 }
 0x5d5   :  { %v1356_v20 = vsel %vm1353_vm10, %v1355_v3, %v1351_v4  ;;  %v1366_v13 = vsel %vm1365_vm15, %v1498_v19, %v1362_v45 }
 0x5d6   :  { %v1371_v0 = vsel %vm1368_vm14, %v1370_v31, %v1366_v13  ;;  %v1373_v26 = vmul.f32 %v1356_v20, %v2803_v62 }
 0x5d7   :  { %v1374_v27 = vmul.f32 %v1371_v0, %v2805_v5 }
 0x5d8   :  { %1375 = vst [vmem:[%s2827_s7] sm:$0xff] %v1373_v26 }
 0x5d9   :  { %1376 = vst [vmem:[%s2827_s7 + $0x8] sm:$0xff] %v1374_v27 }

</bundles_post_ra>
